<compile_context>
chip_gen: v7x
topology: tpu7x:2x2x1
jax: 0.10.0
libtpu: 0.0.40
codegen_flags: <defaults>
</compile_context>

<pallas_src>
import functools
import math

import jax
import jax.numpy as jnp
from jax.experimental import pallas as pl
from jax.experimental.pallas import tpu as pltpu

_HALF_LOG_2PI = 0.5 * math.log(2.0 * math.pi)


def _round_up(x, m):
    return ((x + m - 1) // m) * m


def actor_critic_eval_kernel(
    state_ref, action_ref,
    acw1_ref, acb1_ref,                      # fused (actor L1 | critic L1)
    a_w2_ref, a_b2_ref, a_w3_ref, a_b3_ref,  # actor trunk layers 2, 3
    head_w_ref, head_b_ref,                  # fused (mean | log_std) heads
    c_w2_ref, c_b2_ref, c_w3_ref, c_b3_ref,  # critic layers 2, 3
    out_ref,                                 # (2, TILE_B): [logprob; value]
    *, compute_dtype,
):
    hidden = a_w2_ref.shape[0]
    action_dim = action_ref.shape[0]
    f32 = jnp.float32
    low_precision = jnp.dtype(compute_dtype) != jnp.dtype(f32)

    x = state_ref[...]                       # (state_dim, TILE_B)
    act = action_ref[...].astype(f32)        # (action_dim, TILE_B)

    def linear(w_ref, b_ref, h):
        # w: (out, in), b: (out, 1), h: (in, T) -> f32 (out, T) on the MXU.
        return (jnp.dot(w_ref[...], h.astype(w_ref.dtype),
                        preferred_element_type=f32)
                + b_ref[...].astype(f32))

    def nonlin(pre):
        # bf16 tanh on v6e/v7x (~2x EUP) when compute_dtype=bfloat16; f32 otherwise.
        return jnp.tanh(pre.astype(compute_dtype)) if low_precision else jnp.tanh(pre)

    # ---- fused first layer: actor & critic both consume the state ----
    hc = nonlin(linear(acw1_ref, acb1_ref, x))          # (2*hidden, T)
    h = hc[:hidden]                                     # actor branch
    c = hc[hidden:]                                     # critic branch

    # ---- actor trunk ----
    h = nonlin(linear(a_w2_ref, a_b2_ref, h))
    h = nonlin(linear(a_w3_ref, a_b3_ref, h))

    # ---- fused mean | log_std heads (one MXU push) ----
    ms = linear(head_w_ref, head_b_ref, h)              # (2*action_dim, T), f32
    mean = ms[:action_dim]
    log_std = ms[action_dim:]

    # ---- Normal(mean, exp(log_std)).log_prob(action).sum(features) ----
    inv_std = jnp.exp(-log_std)                         # one EUP exp, no divide
    z = (act - mean) * inv_std
    lp = -0.5 * (z * z) - log_std - _HALF_LOG_2PI
    logprob = jnp.sum(lp, axis=0, keepdims=True)        # (1, T)

    # ---- critic ----
    c = nonlin(linear(c_w2_ref, c_b2_ref, c))
    value = linear(c_w3_ref, c_b3_ref, c)               # (1, T)

    # two direct lane-dense stores (no concatenate / sublane relayout)
    out_ref[0:1, :] = logprob
    out_ref[1:2, :] = value


def actor_critic_evaluate(state_fm, action_fm, params, *,
                          tile_b=4096, compute_dtype=jnp.float32):
    """Fused ActorCritic.evaluate.

    Args:
      state_fm:  (state_dim, B) feature-major states (batch on the last axis).
      action_fm: (action_dim, B) feature-major actions.
      params:    tuple from make_params().
      tile_b:    batch tile (rounded up to a multiple of 128).
      compute_dtype: jnp.float32 (exact, default / v5e) or jnp.bfloat16 (v6e/v7x).

    Returns:
      (action_logprobs (B,), state_values (B, 1)) in float32.
    """
    state_dim, B = state_fm.shape
    action_dim = action_fm.shape[0]
    hidden = params[2].shape[0]              # a_w2: (hidden, hidden)

    # ---- tile sizing: fix the tile count first so B_pad overshoots B by at
    # most ~128 per tile; force >= 2 tiles when there is enough work so v7x's
    # second TensorCore is used via the "parallel" batch axis.
    tile_b = _round_up(max(int(tile_b), 128), 128)
    B_al = _round_up(B, 128)
    n_tiles = pl.cdiv(B_al, tile_b)
    if B_al >= 256:
        n_tiles = max(n_tiles, 2)
    TILE_B = _round_up(pl.cdiv(B_al, n_tiles), 128)
    n_tiles = pl.cdiv(B_al, TILE_B)
    if B_al >= 256:
        n_tiles = max(n_tiles, 2)
    B_pad = n_tiles * TILE_B

    x = state_fm.astype(jnp.float32)
    a = action_fm.astype(jnp.float32)
    if B_pad != B:
        # Only pay for a pad when the batch is not tile-aligned (no transpose ever).
        x = jnp.pad(x, ((0, 0), (0, B_pad - B)))
        a = jnp.pad(a, ((0, 0), (0, B_pad - B)))

    if jnp.dtype(compute_dtype) != jnp.dtype(jnp.float32):
        params = tuple(p.astype(compute_dtype) for p in params)

    kernel = functools.partial(actor_critic_eval_kernel, compute_dtype=compute_dtype)

    data_specs = [
        pl.BlockSpec((state_dim, TILE_B), lambda i: (0, i)),
        pl.BlockSpec((action_dim, TILE_B), lambda i: (0, i)),
    ]
    out_spec = pl.BlockSpec((2, TILE_B), lambda i: (0, i))

    params_bytes = sum(int(p.size) * p.dtype.itemsize for p in params)
    cost = pl.CostEstimate(
        flops=2 * B_pad * (state_dim * 2 * hidden + 3 * hidden * hidden
                           + hidden * (2 * action_dim + 1)),
        transcendentals=B_pad * (5 * hidden + action_dim),
        bytes_accessed=4 * B_pad * (state_dim + action_dim + 2) + params_bytes,
    )

    def build(single_buffer_weights):
        if single_buffer_weights:
            # Weights never change block index -> single buffer, no redundant
            # second copy / prologue DMA wave.
            w_specs = [pl.BlockSpec(p.shape, lambda i: (0, 0),
                                    pipeline_mode=pl.Buffered(1)) for p in params]
        else:
            w_specs = [pl.BlockSpec(p.shape, lambda i: (0, 0)) for p in params]
        return pl.pallas_call(
            kernel,
            out_shape=jax.ShapeDtypeStruct((2, B_pad), jnp.float32),
            grid=(n_tiles,),
            in_specs=data_specs + w_specs,
            out_specs=out_spec,
            compiler_params=pltpu.CompilerParams(
                dimension_semantics=("parallel",),
                vmem_limit_bytes=32 * 1024 * 1024,
            ),
            cost_estimate=cost,
        )

    try:
        out = build(True)(x, a, *params)
    except Exception:
        # Older JAX without pipeline_mode / Buffered(1): default double buffering.
        out = build(False)(x, a, *params)

    logprob = out[0, :B]
    value = out[1, :B][:, None]
    return logprob, value


def actor_critic_evaluate_batch_major(state, action, params, **kw):
    """PyTorch-layout convenience path ((B, state_dim) / (B, action_dim)).

    The transposes are separate XLA ops costing an extra HBM round trip;
    prefer keeping rollout buffers feature-major and calling
    actor_critic_evaluate directly.
    """
    return actor_critic_evaluate(state.T, action.T, params, **kw)


def init_linear(key, in_dim, out_dim):
    """PyTorch-style nn.Linear init, kept in (out, in) / (out, 1) layout."""
    kw, kb = jax.random.split(key)
    bound = 1.0 / math.sqrt(in_dim)
    w = jax.random.uniform(kw, (out_dim, in_dim), jnp.float32, -bound, bound)
    b = jax.random.uniform(kb, (out_dim, 1), jnp.float32, -bound, bound)
    return w, b


def make_params(key, state_dim, action_dim, hidden):
    keys = jax.random.split(key, 8)
    a_w1, a_b1 = init_linear(keys[0], state_dim, hidden)
    a_w2, a_b2 = init_linear(keys[1], hidden, hidden)
    a_w3, a_b3 = init_linear(keys[2], hidden, hidden)
    mean_w, mean_b = init_linear(keys[3], hidden, action_dim)
    std_w, std_b = init_linear(keys[4], hidden, action_dim)
    c_w1, c_b1 = init_linear(keys[5], state_dim, hidden)
    c_w2, c_b2 = init_linear(keys[6], hidden, hidden)
    c_w3, c_b3 = init_linear(keys[7], hidden, 1)
    # Fuse layers that share an input -> fewer tiny MXU pushes / DMAs.
    acw1 = jnp.concatenate([a_w1, c_w1], axis=0)         # (2*hidden, state_dim)
    acb1 = jnp.concatenate([a_b1, c_b1], axis=0)         # (2*hidden, 1)
    head_w = jnp.concatenate([mean_w, std_w], axis=0)    # (2*action_dim, hidden)
    head_b = jnp.concatenate([mean_b, std_b], axis=0)    # (2*action_dim, 1)
    return (acw1, acb1, a_w2, a_b2, a_w3, a_b3,
            head_w, head_b, c_w2, c_b2, c_w3, c_b3)


def actor_critic_evaluate_ref(state, action, params):
    """Pure-JAX reference of ActorCritic.evaluate (batch-major inputs)."""
    (acw1, acb1, a_w2, a_b2, a_w3, a_b3,
     head_w, head_b, c_w2, c_b2, c_w3, c_b3) = params
    hidden = a_w2.shape[0]
    action_dim = head_w.shape[0] // 2
    a_w1, c_w1 = acw1[:hidden], acw1[hidden:]
    a_b1, c_b1 = acb1[:hidden], acb1[hidden:]
    mean_w, std_w = head_w[:action_dim], head_w[action_dim:]
    mean_b, std_b = head_b[:action_dim], head_b[action_dim:]

    def dense(h, w, b):
        return jnp.matmul(h, w.T, precision="highest") + b[:, 0]

    h = jnp.tanh(dense(state, a_w1, a_b1))
    h = jnp.tanh(dense(h, a_w2, a_b2))
    h = jnp.tanh(dense(h, a_w3, a_b3))
    mean = dense(h, mean_w, mean_b)
    log_std = dense(h, std_w, std_b)
    std = jnp.exp(log_std)
    lp = (-((action - mean) ** 2) / (2.0 * std * std)
          - log_std - 0.5 * math.log(2.0 * math.pi))
    logprob = jnp.sum(lp, axis=-1)
    c = jnp.tanh(dense(state, c_w1, c_b1))
    c = jnp.tanh(dense(c, c_w2, c_b2))
    value = dense(c, c_w3, c_b3)
    return logprob, value


if __name__ == "__main__":
    STATE_DIM, ACTION_DIM, HIDDEN, BATCH = 16, 4, 32, 8

    key = jax.random.PRNGKey(0)
    k_params, k_state, k_action = jax.random.split(key, 3)

    params = make_params(k_params, STATE_DIM, ACTION_DIM, HIDDEN)
    # Feature-major inputs (batch on the last axis) -> zero-copy kernel path.
    state_fm = jax.random.normal(k_state, (STATE_DIM, BATCH), jnp.float32)
    action_fm = jax.random.normal(k_action, (ACTION_DIM, BATCH), jnp.float32)

    logprob, value = actor_critic_evaluate(state_fm, action_fm, params)
    jax.block_until_ready((logprob, value))

    ref_logprob, ref_value = actor_critic_evaluate_ref(state_fm.T, action_fm.T, params)
    assert logprob.shape == (BATCH,)
    assert value.shape == (BATCH, 1)
    assert jnp.allclose(logprob, ref_logprob, atol=1e-4, rtol=1e-4)
    assert jnp.allclose(value, ref_value, atol=1e-4, rtol=1e-4)

    print("KERNEL_OK")
</pallas_src>

<mosaic_0001>
module attributes {stable_mosaic.version = 11 : i64} {
  func.func @actor_critic_eval_kernel(%arg0: i32, %arg1: memref<16x128xf32, #tpu.memory_space<vmem>>, %arg2: memref<4x128xf32, #tpu.memory_space<vmem>>, %arg3: memref<64x16xf32, #tpu.memory_space<vmem>>, %arg4: memref<64x1xf32, #tpu.memory_space<vmem>>, %arg5: memref<32x32xf32, #tpu.memory_space<vmem>>, %arg6: memref<32x1xf32, #tpu.memory_space<vmem>>, %arg7: memref<32x32xf32, #tpu.memory_space<vmem>>, %arg8: memref<32x1xf32, #tpu.memory_space<vmem>>, %arg9: memref<8x32xf32, #tpu.memory_space<vmem>>, %arg10: memref<8x1xf32, #tpu.memory_space<vmem>>, %arg11: memref<32x32xf32, #tpu.memory_space<vmem>>, %arg12: memref<32x1xf32, #tpu.memory_space<vmem>>, %arg13: memref<1x32xf32, #tpu.memory_space<vmem>>, %arg14: memref<1x1xf32, #tpu.memory_space<vmem>>, %arg15: memref<2x128xf32, #tpu.memory_space<vmem>>) attributes {dimension_semantics = [#tpu.dimension_semantics<parallel>], iteration_bounds = array<i64: 1>, scalar_prefetch = 0 : i64, scratch_operands = 0 : i64, tpu.core_type = #tpu.core_type<tc>, window_params = [{transform_indices = @transform_0, window_bounds = array<i64: 16, 128>}, {transform_indices = @transform_1, window_bounds = array<i64: 4, 128>}, {pipeline_mode = #tpu.pipeline_mode<synchronous>, transform_indices = @transform_2, window_bounds = array<i64: 64, 16>}, {pipeline_mode = #tpu.pipeline_mode<synchronous>, transform_indices = @transform_3, window_bounds = array<i64: 64, 1>}, {pipeline_mode = #tpu.pipeline_mode<synchronous>, transform_indices = @transform_4, window_bounds = array<i64: 32, 32>}, {pipeline_mode = #tpu.pipeline_mode<synchronous>, transform_indices = @transform_5, window_bounds = array<i64: 32, 1>}, {pipeline_mode = #tpu.pipeline_mode<synchronous>, transform_indices = @transform_6, window_bounds = array<i64: 32, 32>}, {pipeline_mode = #tpu.pipeline_mode<synchronous>, transform_indices = @transform_7, window_bounds = array<i64: 32, 1>}, {pipeline_mode = #tpu.pipeline_mode<synchronous>, transform_indices = @transform_8, window_bounds = array<i64: 8, 32>}, {pipeline_mode = #tpu.pipeline_mode<synchronous>, transform_indices = @transform_9, window_bounds = array<i64: 8, 1>}, {pipeline_mode = #tpu.pipeline_mode<synchronous>, transform_indices = @transform_10, window_bounds = array<i64: 32, 32>}, {pipeline_mode = #tpu.pipeline_mode<synchronous>, transform_indices = @transform_11, window_bounds = array<i64: 32, 1>}, {pipeline_mode = #tpu.pipeline_mode<synchronous>, transform_indices = @transform_12, window_bounds = array<i64: 1, 32>}, {pipeline_mode = #tpu.pipeline_mode<synchronous>, transform_indices = @transform_13, window_bounds = array<i64: 1, 1>}, {transform_indices = @transform_14, window_bounds = array<i64: 2, 128>}]} {
    %c0 = arith.constant 0 : index
    %c0_0 = arith.constant 0 : index
    %0 = vector.load %arg1[%c0, %c0_0] : memref<16x128xf32, #tpu.memory_space<vmem>>, vector<16x128xf32>
    %c0_1 = arith.constant 0 : index
    %c0_2 = arith.constant 0 : index
    %1 = vector.load %arg2[%c0_1, %c0_2] : memref<4x128xf32, #tpu.memory_space<vmem>>, vector<4x128xf32>
    %c0_3 = arith.constant 0 : index
    %c0_4 = arith.constant 0 : index
    %2 = vector.load %arg3[%c0_3, %c0_4] : memref<64x16xf32, #tpu.memory_space<vmem>>, vector<64x16xf32>
    %cst = arith.constant dense<0.000000e+00> : vector<64x128xf32>
    %3 = tpu.matmul %2, %0, %cst {dimension_numbers = #tpu.dot_dimension_numbers<[1], [0], [0], [1], [0, 0, 1, 1], [], []>} : vector<64x16xf32>, vector<16x128xf32>, vector<64x128xf32> -> vector<64x128xf32>
    %c0_5 = arith.constant 0 : index
    %c0_6 = arith.constant 0 : index
    %4 = vector.load %arg4[%c0_5, %c0_6] : memref<64x1xf32, #tpu.memory_space<vmem>>, vector<64x1xf32>
    %5 = vector.broadcast %4 : vector<64x1xf32> to vector<64x128xf32>
    %6 = arith.addf %3, %5 : vector<64x128xf32>
    %7 = math.tanh %6 : vector<64x128xf32>
    %8 = vector.extract_strided_slice %7 {offsets = [0, 0], sizes = [32, 128], strides = [1, 1]} : vector<64x128xf32> to vector<32x128xf32>
    %9 = vector.extract_strided_slice %7 {offsets = [32, 0], sizes = [32, 128], strides = [1, 1]} : vector<64x128xf32> to vector<32x128xf32>
    %c0_7 = arith.constant 0 : index
    %c0_8 = arith.constant 0 : index
    %10 = vector.load %arg5[%c0_7, %c0_8] : memref<32x32xf32, #tpu.memory_space<vmem>>, vector<32x32xf32>
    %cst_9 = arith.constant dense<0.000000e+00> : vector<32x128xf32>
    %11 = tpu.matmul %10, %8, %cst_9 {dimension_numbers = #tpu.dot_dimension_numbers<[1], [0], [0], [1], [0, 0, 1, 1], [], []>} : vector<32x32xf32>, vector<32x128xf32>, vector<32x128xf32> -> vector<32x128xf32>
    %c0_10 = arith.constant 0 : index
    %c0_11 = arith.constant 0 : index
    %12 = vector.load %arg6[%c0_10, %c0_11] : memref<32x1xf32, #tpu.memory_space<vmem>>, vector<32x1xf32>
    %13 = vector.broadcast %12 : vector<32x1xf32> to vector<32x128xf32>
    %14 = arith.addf %11, %13 : vector<32x128xf32>
    %15 = math.tanh %14 : vector<32x128xf32>
    %c0_12 = arith.constant 0 : index
    %c0_13 = arith.constant 0 : index
    %16 = vector.load %arg7[%c0_12, %c0_13] : memref<32x32xf32, #tpu.memory_space<vmem>>, vector<32x32xf32>
    %cst_14 = arith.constant dense<0.000000e+00> : vector<32x128xf32>
    %17 = tpu.matmul %16, %15, %cst_14 {dimension_numbers = #tpu.dot_dimension_numbers<[1], [0], [0], [1], [0, 0, 1, 1], [], []>} : vector<32x32xf32>, vector<32x128xf32>, vector<32x128xf32> -> vector<32x128xf32>
    %c0_15 = arith.constant 0 : index
    %c0_16 = arith.constant 0 : index
    %18 = vector.load %arg8[%c0_15, %c0_16] : memref<32x1xf32, #tpu.memory_space<vmem>>, vector<32x1xf32>
    %19 = vector.broadcast %18 : vector<32x1xf32> to vector<32x128xf32>
    %20 = arith.addf %17, %19 : vector<32x128xf32>
    %21 = math.tanh %20 : vector<32x128xf32>
    %c0_17 = arith.constant 0 : index
    %c0_18 = arith.constant 0 : index
    %22 = vector.load %arg9[%c0_17, %c0_18] : memref<8x32xf32, #tpu.memory_space<vmem>>, vector<8x32xf32>
    %cst_19 = arith.constant dense<0.000000e+00> : vector<8x128xf32>
    %23 = tpu.matmul %22, %21, %cst_19 {dimension_numbers = #tpu.dot_dimension_numbers<[1], [0], [0], [1], [0, 0, 1, 1], [], []>} : vector<8x32xf32>, vector<32x128xf32>, vector<8x128xf32> -> vector<8x128xf32>
    %c0_20 = arith.constant 0 : index
    %c0_21 = arith.constant 0 : index
    %24 = vector.load %arg10[%c0_20, %c0_21] : memref<8x1xf32, #tpu.memory_space<vmem>>, vector<8x1xf32>
    %25 = vector.broadcast %24 : vector<8x1xf32> to vector<8x128xf32>
    %26 = arith.addf %23, %25 : vector<8x128xf32>
    %27 = vector.extract_strided_slice %26 {offsets = [0, 0], sizes = [4, 128], strides = [1, 1]} : vector<8x128xf32> to vector<4x128xf32>
    %28 = vector.extract_strided_slice %26 {offsets = [4, 0], sizes = [4, 128], strides = [1, 1]} : vector<8x128xf32> to vector<4x128xf32>
    %cst_22 = arith.constant 0.000000e+00 : f32
    %29 = vector.broadcast %cst_22 : f32 to vector<4x128xf32>
    %30 = arith.subf %29, %28 : vector<4x128xf32>
    %31 = math.exp %30 : vector<4x128xf32>
    %32 = arith.subf %1, %27 : vector<4x128xf32>
    %33 = arith.mulf %32, %31 : vector<4x128xf32>
    %34 = arith.mulf %33, %33 : vector<4x128xf32>
    %cst_23 = arith.constant -5.000000e-01 : f32
    %35 = vector.broadcast %cst_23 : f32 to vector<4x128xf32>
    %36 = arith.mulf %35, %34 : vector<4x128xf32>
    %37 = arith.subf %36, %28 : vector<4x128xf32>
    %cst_24 = arith.constant 0.918938517 : f32
    %38 = vector.broadcast %cst_24 : f32 to vector<4x128xf32>
    %39 = arith.subf %37, %38 : vector<4x128xf32>
    %cst_25 = arith.constant dense<0.000000e+00> : vector<128xf32>
    %40 = vector.multi_reduction <add>, %39, %cst_25 [0] : vector<4x128xf32> to vector<128xf32>
    %41 = vector.shape_cast %40 : vector<128xf32> to vector<1x128xf32>
    %c0_26 = arith.constant 0 : index
    %c0_27 = arith.constant 0 : index
    %42 = vector.load %arg11[%c0_26, %c0_27] : memref<32x32xf32, #tpu.memory_space<vmem>>, vector<32x32xf32>
    %cst_28 = arith.constant dense<0.000000e+00> : vector<32x128xf32>
    %43 = tpu.matmul %42, %9, %cst_28 {dimension_numbers = #tpu.dot_dimension_numbers<[1], [0], [0], [1], [0, 0, 1, 1], [], []>} : vector<32x32xf32>, vector<32x128xf32>, vector<32x128xf32> -> vector<32x128xf32>
    %c0_29 = arith.constant 0 : index
    %c0_30 = arith.constant 0 : index
    %44 = vector.load %arg12[%c0_29, %c0_30] : memref<32x1xf32, #tpu.memory_space<vmem>>, vector<32x1xf32>
    %45 = vector.broadcast %44 : vector<32x1xf32> to vector<32x128xf32>
    %46 = arith.addf %43, %45 : vector<32x128xf32>
    %47 = math.tanh %46 : vector<32x128xf32>
    %c0_31 = arith.constant 0 : index
    %c0_32 = arith.constant 0 : index
    %48 = vector.load %arg13[%c0_31, %c0_32] : memref<1x32xf32, #tpu.memory_space<vmem>>, vector<1x32xf32>
    %cst_33 = arith.constant dense<0.000000e+00> : vector<1x128xf32>
    %49 = tpu.matmul %48, %47, %cst_33 {dimension_numbers = #tpu.dot_dimension_numbers<[1], [0], [0], [1], [0, 0, 1, 1], [], []>} : vector<1x32xf32>, vector<32x128xf32>, vector<1x128xf32> -> vector<1x128xf32>
    %c0_34 = arith.constant 0 : index
    %c0_35 = arith.constant 0 : index
    %50 = vector.load %arg14[%c0_34, %c0_35] : memref<1x1xf32, #tpu.memory_space<vmem>>, vector<1x1xf32>
    %51 = vector.broadcast %50 : vector<1x1xf32> to vector<1x128xf32>
    %52 = arith.addf %49, %51 : vector<1x128xf32>
    %c0_36 = arith.constant 0 : index
    %c0_37 = arith.constant 0 : index
    %53 = vector.load %arg15[%c0_36, %c0_37] : memref<2x128xf32, #tpu.memory_space<vmem>>, vector<1x128xf32>
    tpu.vector_store %arg15[%c0_36, %c0_37], %41 {strides = array<i32>} : memref<2x128xf32, #tpu.memory_space<vmem>>, vector<1x128xf32>,
    %c1 = arith.constant 1 : index
    %c0_38 = arith.constant 0 : index
    %54 = vector.load %arg15[%c1, %c0_38] : memref<2x128xf32, #tpu.memory_space<vmem>>, vector<1x128xf32>
    tpu.vector_store %arg15[%c1, %c0_38], %52 {strides = array<i32>} : memref<2x128xf32, #tpu.memory_space<vmem>>, vector<1x128xf32>,
    return
  }
  func.func @transform_0(%arg0: i32) -> (i32, i32) {
    %c0_i32 = arith.constant 0 : i32
    %c0_i32_0 = arith.constant 0 : i32
    return %c0_i32, %arg0 : i32, i32
  }
  func.func @transform_1(%arg0: i32) -> (i32, i32) {
    %c0_i32 = arith.constant 0 : i32
    %c0_i32_0 = arith.constant 0 : i32
    return %c0_i32, %arg0 : i32, i32
  }
  func.func @transform_2(%arg0: i32) -> (i32, i32) {
    %c0_i32 = arith.constant 0 : i32
    %c0_i32_0 = arith.constant 0 : i32
    %c0_i32_1 = arith.constant 0 : i32
    return %c0_i32, %c0_i32_0 : i32, i32
  }
  func.func @transform_3(%arg0: i32) -> (i32, i32) {
    %c0_i32 = arith.constant 0 : i32
    %c0_i32_0 = arith.constant 0 : i32
    %c0_i32_1 = arith.constant 0 : i32
    return %c0_i32, %c0_i32_0 : i32, i32
  }
  func.func @transform_4(%arg0: i32) -> (i32, i32) {
    %c0_i32 = arith.constant 0 : i32
    %c0_i32_0 = arith.constant 0 : i32
    %c0_i32_1 = arith.constant 0 : i32
    return %c0_i32, %c0_i32_0 : i32, i32
  }
  func.func @transform_5(%arg0: i32) -> (i32, i32) {
    %c0_i32 = arith.constant 0 : i32
    %c0_i32_0 = arith.constant 0 : i32
    %c0_i32_1 = arith.constant 0 : i32
    return %c0_i32, %c0_i32_0 : i32, i32
  }
  func.func @transform_6(%arg0: i32) -> (i32, i32) {
    %c0_i32 = arith.constant 0 : i32
    %c0_i32_0 = arith.constant 0 : i32
    %c0_i32_1 = arith.constant 0 : i32
    return %c0_i32, %c0_i32_0 : i32, i32
  }
  func.func @transform_7(%arg0: i32) -> (i32, i32) {
    %c0_i32 = arith.constant 0 : i32
    %c0_i32_0 = arith.constant 0 : i32
    %c0_i32_1 = arith.constant 0 : i32
    return %c0_i32, %c0_i32_0 : i32, i32
  }
  func.func @transform_8(%arg0: i32) -> (i32, i32) {
    %c0_i32 = arith.constant 0 : i32
    %c0_i32_0 = arith.constant 0 : i32
    %c0_i32_1 = arith.constant 0 : i32
    return %c0_i32, %c0_i32_0 : i32, i32
  }
  func.func @transform_9(%arg0: i32) -> (i32, i32) {
    %c0_i32 = arith.constant 0 : i32
    %c0_i32_0 = arith.constant 0 : i32
    %c0_i32_1 = arith.constant 0 : i32
    return %c0_i32, %c0_i32_0 : i32, i32
  }
  func.func @transform_10(%arg0: i32) -> (i32, i32) {
    %c0_i32 = arith.constant 0 : i32
    %c0_i32_0 = arith.constant 0 : i32
    %c0_i32_1 = arith.constant 0 : i32
    return %c0_i32, %c0_i32_0 : i32, i32
  }
  func.func @transform_11(%arg0: i32) -> (i32, i32) {
    %c0_i32 = arith.constant 0 : i32
    %c0_i32_0 = arith.constant 0 : i32
    %c0_i32_1 = arith.constant 0 : i32
    return %c0_i32, %c0_i32_0 : i32, i32
  }
  func.func @transform_12(%arg0: i32) -> (i32, i32) {
    %c0_i32 = arith.constant 0 : i32
    %c0_i32_0 = arith.constant 0 : i32
    %c0_i32_1 = arith.constant 0 : i32
    return %c0_i32, %c0_i32_0 : i32, i32
  }
  func.func @transform_13(%arg0: i32) -> (i32, i32) {
    %c0_i32 = arith.constant 0 : i32
    %c0_i32_0 = arith.constant 0 : i32
    %c0_i32_1 = arith.constant 0 : i32
    return %c0_i32, %c0_i32_0 : i32, i32
  }
  func.func @transform_14(%arg0: i32) -> (i32, i32) {
    %c0_i32 = arith.constant 0 : i32
    %c0_i32_0 = arith.constant 0 : i32
    return %c0_i32, %arg0 : i32, i32
  }
}

module attributes {stable_mosaic.version = 11 : i64} {
  func.func @actor_critic_eval_kernel(%arg0: i32, %arg1: memref<16x128xf32, #tpu.memory_space<vmem>>, %arg2: memref<4x128xf32, #tpu.memory_space<vmem>>, %arg3: memref<64x16xf32, #tpu.memory_space<vmem>>, %arg4: memref<64x1xf32, #tpu.memory_space<vmem>>, %arg5: memref<32x32xf32, #tpu.memory_space<vmem>>, %arg6: memref<32x1xf32, #tpu.memory_space<vmem>>, %arg7: memref<32x32xf32, #tpu.memory_space<vmem>>, %arg8: memref<32x1xf32, #tpu.memory_space<vmem>>, %arg9: memref<8x32xf32, #tpu.memory_space<vmem>>, %arg10: memref<8x1xf32, #tpu.memory_space<vmem>>, %arg11: memref<32x32xf32, #tpu.memory_space<vmem>>, %arg12: memref<32x1xf32, #tpu.memory_space<vmem>>, %arg13: memref<1x32xf32, #tpu.memory_space<vmem>>, %arg14: memref<1x1xf32, #tpu.memory_space<vmem>>, %arg15: memref<2x128xf32, #tpu.memory_space<vmem>>) attributes {dimension_semantics = [#tpu.dimension_semantics<parallel>], iteration_bounds = array<i64: 1>, scalar_prefetch = 0 : i64, scratch_operands = 0 : i64, tpu.core_type = #tpu.core_type<tc>, window_params = [{transform_indices = @transform_0, window_bounds = array<i64: 16, 128>}, {transform_indices = @transform_1, window_bounds = array<i64: 4, 128>}, {pipeline_mode = #tpu.pipeline_mode<synchronous>, transform_indices = @transform_2, window_bounds = array<i64: 64, 16>}, {pipeline_mode = #tpu.pipeline_mode<synchronous>, transform_indices = @transform_3, window_bounds = array<i64: 64, 1>}, {pipeline_mode = #tpu.pipeline_mode<synchronous>, transform_indices = @transform_4, window_bounds = array<i64: 32, 32>}, {pipeline_mode = #tpu.pipeline_mode<synchronous>, transform_indices = @transform_5, window_bounds = array<i64: 32, 1>}, {pipeline_mode = #tpu.pipeline_mode<synchronous>, transform_indices = @transform_6, window_bounds = array<i64: 32, 32>}, {pipeline_mode = #tpu.pipeline_mode<synchronous>, transform_indices = @transform_7, window_bounds = array<i64: 32, 1>}, {pipeline_mode = #tpu.pipeline_mode<synchronous>, transform_indices = @transform_8, window_bounds = array<i64: 8, 32>}, {pipeline_mode = #tpu.pipeline_mode<synchronous>, transform_indices = @transform_9, window_bounds = array<i64: 8, 1>}, {pipeline_mode = #tpu.pipeline_mode<synchronous>, transform_indices = @transform_10, window_bounds = array<i64: 32, 32>}, {pipeline_mode = #tpu.pipeline_mode<synchronous>, transform_indices = @transform_11, window_bounds = array<i64: 32, 1>}, {pipeline_mode = #tpu.pipeline_mode<synchronous>, transform_indices = @transform_12, window_bounds = array<i64: 1, 32>}, {pipeline_mode = #tpu.pipeline_mode<synchronous>, transform_indices = @transform_13, window_bounds = array<i64: 1, 1>}, {transform_indices = @transform_14, window_bounds = array<i64: 2, 128>}]} {
    %c0 = arith.constant 0 : index
    %c0_0 = arith.constant 0 : index
    %0 = vector.load %arg1[%c0, %c0_0] : memref<16x128xf32, #tpu.memory_space<vmem>>, vector<16x128xf32>
    %c0_1 = arith.constant 0 : index
    %c0_2 = arith.constant 0 : index
    %1 = vector.load %arg2[%c0_1, %c0_2] : memref<4x128xf32, #tpu.memory_space<vmem>>, vector<4x128xf32>
    %c0_3 = arith.constant 0 : index
    %c0_4 = arith.constant 0 : index
    %2 = vector.load %arg3[%c0_3, %c0_4] : memref<64x16xf32, #tpu.memory_space<vmem>>, vector<64x16xf32>
    %cst = arith.constant dense<0.000000e+00> : vector<64x128xf32>
    %3 = tpu.matmul %2, %0, %cst {dimension_numbers = #tpu.dot_dimension_numbers<[1], [0], [0], [1], [0, 0, 1, 1], [], []>} : vector<64x16xf32>, vector<16x128xf32>, vector<64x128xf32> -> vector<64x128xf32>
    %c0_5 = arith.constant 0 : index
    %c0_6 = arith.constant 0 : index
    %4 = vector.load %arg4[%c0_5, %c0_6] : memref<64x1xf32, #tpu.memory_space<vmem>>, vector<64x1xf32>
    %5 = vector.broadcast %4 : vector<64x1xf32> to vector<64x128xf32>
    %6 = arith.addf %3, %5 : vector<64x128xf32>
    %7 = math.tanh %6 : vector<64x128xf32>
    %8 = vector.extract_strided_slice %7 {offsets = [0, 0], sizes = [32, 128], strides = [1, 1]} : vector<64x128xf32> to vector<32x128xf32>
    %9 = vector.extract_strided_slice %7 {offsets = [32, 0], sizes = [32, 128], strides = [1, 1]} : vector<64x128xf32> to vector<32x128xf32>
    %c0_7 = arith.constant 0 : index
    %c0_8 = arith.constant 0 : index
    %10 = vector.load %arg5[%c0_7, %c0_8] : memref<32x32xf32, #tpu.memory_space<vmem>>, vector<32x32xf32>
    %cst_9 = arith.constant dense<0.000000e+00> : vector<32x128xf32>
    %11 = tpu.matmul %10, %8, %cst_9 {dimension_numbers = #tpu.dot_dimension_numbers<[1], [0], [0], [1], [0, 0, 1, 1], [], []>} : vector<32x32xf32>, vector<32x128xf32>, vector<32x128xf32> -> vector<32x128xf32>
    %c0_10 = arith.constant 0 : index
    %c0_11 = arith.constant 0 : index
    %12 = vector.load %arg6[%c0_10, %c0_11] : memref<32x1xf32, #tpu.memory_space<vmem>>, vector<32x1xf32>
    %13 = vector.broadcast %12 : vector<32x1xf32> to vector<32x128xf32>
    %14 = arith.addf %11, %13 : vector<32x128xf32>
    %15 = math.tanh %14 : vector<32x128xf32>
    %c0_12 = arith.constant 0 : index
    %c0_13 = arith.constant 0 : index
    %16 = vector.load %arg7[%c0_12, %c0_13] : memref<32x32xf32, #tpu.memory_space<vmem>>, vector<32x32xf32>
    %cst_14 = arith.constant dense<0.000000e+00> : vector<32x128xf32>
    %17 = tpu.matmul %16, %15, %cst_14 {dimension_numbers = #tpu.dot_dimension_numbers<[1], [0], [0], [1], [0, 0, 1, 1], [], []>} : vector<32x32xf32>, vector<32x128xf32>, vector<32x128xf32> -> vector<32x128xf32>
    %c0_15 = arith.constant 0 : index
    %c0_16 = arith.constant 0 : index
    %18 = vector.load %arg8[%c0_15, %c0_16] : memref<32x1xf32, #tpu.memory_space<vmem>>, vector<32x1xf32>
    %19 = vector.broadcast %18 : vector<32x1xf32> to vector<32x128xf32>
    %20 = arith.addf %17, %19 : vector<32x128xf32>
    %21 = math.tanh %20 : vector<32x128xf32>
    %c0_17 = arith.constant 0 : index
    %c0_18 = arith.constant 0 : index
    %22 = vector.load %arg9[%c0_17, %c0_18] : memref<8x32xf32, #tpu.memory_space<vmem>>, vector<8x32xf32>
    %cst_19 = arith.constant dense<0.000000e+00> : vector<8x128xf32>
    %23 = tpu.matmul %22, %21, %cst_19 {dimension_numbers = #tpu.dot_dimension_numbers<[1], [0], [0], [1], [0, 0, 1, 1], [], []>} : vector<8x32xf32>, vector<32x128xf32>, vector<8x128xf32> -> vector<8x128xf32>
    %c0_20 = arith.constant 0 : index
    %c0_21 = arith.constant 0 : index
    %24 = vector.load %arg10[%c0_20, %c0_21] : memref<8x1xf32, #tpu.memory_space<vmem>>, vector<8x1xf32>
    %25 = vector.broadcast %24 : vector<8x1xf32> to vector<8x128xf32>
    %26 = arith.addf %23, %25 : vector<8x128xf32>
    %27 = vector.extract_strided_slice %26 {offsets = [0, 0], sizes = [4, 128], strides = [1, 1]} : vector<8x128xf32> to vector<4x128xf32>
    %28 = vector.extract_strided_slice %26 {offsets = [4, 0], sizes = [4, 128], strides = [1, 1]} : vector<8x128xf32> to vector<4x128xf32>
    %cst_22 = arith.constant 0.000000e+00 : f32
    %29 = vector.broadcast %cst_22 : f32 to vector<4x128xf32>
    %30 = arith.subf %29, %28 : vector<4x128xf32>
    %31 = math.exp %30 : vector<4x128xf32>
    %32 = arith.subf %1, %27 : vector<4x128xf32>
    %33 = arith.mulf %32, %31 : vector<4x128xf32>
    %34 = arith.mulf %33, %33 : vector<4x128xf32>
    %cst_23 = arith.constant -5.000000e-01 : f32
    %35 = vector.broadcast %cst_23 : f32 to vector<4x128xf32>
    %36 = arith.mulf %35, %34 : vector<4x128xf32>
    %37 = arith.subf %36, %28 : vector<4x128xf32>
    %cst_24 = arith.constant 0.918938517 : f32
    %38 = vector.broadcast %cst_24 : f32 to vector<4x128xf32>
    %39 = arith.subf %37, %38 : vector<4x128xf32>
    %cst_25 = arith.constant dense<0.000000e+00> : vector<128xf32>
    %40 = vector.multi_reduction <add>, %39, %cst_25 [0] : vector<4x128xf32> to vector<128xf32>
    %41 = vector.shape_cast %40 : vector<128xf32> to vector<1x128xf32>
    %c0_26 = arith.constant 0 : index
    %c0_27 = arith.constant 0 : index
    %42 = vector.load %arg11[%c0_26, %c0_27] : memref<32x32xf32, #tpu.memory_space<vmem>>, vector<32x32xf32>
    %cst_28 = arith.constant dense<0.000000e+00> : vector<32x128xf32>
    %43 = tpu.matmul %42, %9, %cst_28 {dimension_numbers = #tpu.dot_dimension_numbers<[1], [0], [0], [1], [0, 0, 1, 1], [], []>} : vector<32x32xf32>, vector<32x128xf32>, vector<32x128xf32> -> vector<32x128xf32>
    %c0_29 = arith.constant 0 : index
    %c0_30 = arith.constant 0 : index
    %44 = vector.load %arg12[%c0_29, %c0_30] : memref<32x1xf32, #tpu.memory_space<vmem>>, vector<32x1xf32>
    %45 = vector.broadcast %44 : vector<32x1xf32> to vector<32x128xf32>
    %46 = arith.addf %43, %45 : vector<32x128xf32>
    %47 = math.tanh %46 : vector<32x128xf32>
    %c0_31 = arith.constant 0 : index
    %c0_32 = arith.constant 0 : index
    %48 = vector.load %arg13[%c0_31, %c0_32] : memref<1x32xf32, #tpu.memory_space<vmem>>, vector<1x32xf32>
    %cst_33 = arith.constant dense<0.000000e+00> : vector<1x128xf32>
    %49 = tpu.matmul %48, %47, %cst_33 {dimension_numbers = #tpu.dot_dimension_numbers<[1], [0], [0], [1], [0, 0, 1, 1], [], []>} : vector<1x32xf32>, vector<32x128xf32>, vector<1x128xf32> -> vector<1x128xf32>
    %c0_34 = arith.constant 0 : index
    %c0_35 = arith.constant 0 : index
    %50 = vector.load %arg14[%c0_34, %c0_35] : memref<1x1xf32, #tpu.memory_space<vmem>>, vector<1x1xf32>
    %51 = vector.broadcast %50 : vector<1x1xf32> to vector<1x128xf32>
    %52 = arith.addf %49, %51 : vector<1x128xf32>
    %c0_36 = arith.constant 0 : index
    %c0_37 = arith.constant 0 : index
    %53 = vector.load %arg15[%c0_36, %c0_37] : memref<2x128xf32, #tpu.memory_space<vmem>>, vector<1x128xf32>
    tpu.vector_store %arg15[%c0_36, %c0_37], %41 {strides = array<i32>} : memref<2x128xf32, #tpu.memory_space<vmem>>, vector<1x128xf32>,
    %c1 = arith.constant 1 : index
    %c0_38 = arith.constant 0 : index
    %54 = vector.load %arg15[%c1, %c0_38] : memref<2x128xf32, #tpu.memory_space<vmem>>, vector<1x128xf32>
    tpu.vector_store %arg15[%c1, %c0_38], %52 {strides = array<i32>} : memref<2x128xf32, #tpu.memory_space<vmem>>, vector<1x128xf32>,
    return
  }
  func.func @transform_0(%arg0: i32) -> (i32, i32) {
    %c0_i32 = arith.constant 0 : i32
    %c0_i32_0 = arith.constant 0 : i32
    return %c0_i32, %arg0 : i32, i32
  }
  func.func @transform_1(%arg0: i32) -> (i32, i32) {
    %c0_i32 = arith.constant 0 : i32
    %c0_i32_0 = arith.constant 0 : i32
    return %c0_i32, %arg0 : i32, i32
  }
  func.func @transform_2(%arg0: i32) -> (i32, i32) {
    %c0_i32 = arith.constant 0 : i32
    %c0_i32_0 = arith.constant 0 : i32
    %c0_i32_1 = arith.constant 0 : i32
    return %c0_i32, %c0_i32_0 : i32, i32
  }
  func.func @transform_3(%arg0: i32) -> (i32, i32) {
    %c0_i32 = arith.constant 0 : i32
    %c0_i32_0 = arith.constant 0 : i32
    %c0_i32_1 = arith.constant 0 : i32
    return %c0_i32, %c0_i32_0 : i32, i32
  }
  func.func @transform_4(%arg0: i32) -> (i32, i32) {
    %c0_i32 = arith.constant 0 : i32
    %c0_i32_0 = arith.constant 0 : i32
    %c0_i32_1 = arith.constant 0 : i32
    return %c0_i32, %c0_i32_0 : i32, i32
  }
  func.func @transform_5(%arg0: i32) -> (i32, i32) {
    %c0_i32 = arith.constant 0 : i32
    %c0_i32_0 = arith.constant 0 : i32
    %c0_i32_1 = arith.constant 0 : i32
    return %c0_i32, %c0_i32_0 : i32, i32
  }
  func.func @transform_6(%arg0: i32) -> (i32, i32) {
    %c0_i32 = arith.constant 0 : i32
    %c0_i32_0 = arith.constant 0 : i32
    %c0_i32_1 = arith.constant 0 : i32
    return %c0_i32, %c0_i32_0 : i32, i32
  }
  func.func @transform_7(%arg0: i32) -> (i32, i32) {
    %c0_i32 = arith.constant 0 : i32
    %c0_i32_0 = arith.constant 0 : i32
    %c0_i32_1 = arith.constant 0 : i32
    return %c0_i32, %c0_i32_0 : i32, i32
  }
  func.func @transform_8(%arg0: i32) -> (i32, i32) {
    %c0_i32 = arith.constant 0 : i32
    %c0_i32_0 = arith.constant 0 : i32
    %c0_i32_1 = arith.constant 0 : i32
    return %c0_i32, %c0_i32_0 : i32, i32
  }
  func.func @transform_9(%arg0: i32) -> (i32, i32) {
    %c0_i32 = arith.constant 0 : i32
    %c0_i32_0 = arith.constant 0 : i32
    %c0_i32_1 = arith.constant 0 : i32
    return %c0_i32, %c0_i32_0 : i32, i32
  }
  func.func @transform_10(%arg0: i32) -> (i32, i32) {
    %c0_i32 = arith.constant 0 : i32
    %c0_i32_0 = arith.constant 0 : i32
    %c0_i32_1 = arith.constant 0 : i32
    return %c0_i32, %c0_i32_0 : i32, i32
  }
  func.func @transform_11(%arg0: i32) -> (i32, i32) {
    %c0_i32 = arith.constant 0 : i32
    %c0_i32_0 = arith.constant 0 : i32
    %c0_i32_1 = arith.constant 0 : i32
    return %c0_i32, %c0_i32_0 : i32, i32
  }
  func.func @transform_12(%arg0: i32) -> (i32, i32) {
    %c0_i32 = arith.constant 0 : i32
    %c0_i32_0 = arith.constant 0 : i32
    %c0_i32_1 = arith.constant 0 : i32
    return %c0_i32, %c0_i32_0 : i32, i32
  }
  func.func @transform_13(%arg0: i32) -> (i32, i32) {
    %c0_i32 = arith.constant 0 : i32
    %c0_i32_0 = arith.constant 0 : i32
    %c0_i32_1 = arith.constant 0 : i32
    return %c0_i32, %c0_i32_0 : i32, i32
  }
  func.func @transform_14(%arg0: i32) -> (i32, i32) {
    %c0_i32 = arith.constant 0 : i32
    %c0_i32_0 = arith.constant 0 : i32
    return %c0_i32, %arg0 : i32, i32
  }
}

</mosaic_0001>

<bundles_post_ra>
// kernel: tpu_custom_call.1
= control target key start
LH: loop header
LB: loop body
LE: loop exit
PB: predicated region body
PF: predicated region fallthrough
CT: control target
= control target key end

     0   :  { %s1355_s0 = inlined_call_operand.vmem [shape: f32[16,128], index: 0, kind: input, shape index: {}]   ;;  %s1356_s1 = inlined_call_operand.vmem [shape: f32[4,128], index: 1, kind: input, shape index: {}]   ;;  %s1357_s2 = inlined_call_operand.vmem [shape: f32[64,16], index: 2, kind: input, shape index: {}]   ;;  %s1358_s3 = inlined_call_operand.vmem [shape: f32[64,1], index: 3, kind: input, shape index: {}]   ;;  %s1359_s4 = inlined_call_operand.vmem [shape: f32[32,32], index: 4, kind: input, shape index: {}]   ;;  %s1360_s5 = inlined_call_operand.vmem [shape: f32[32,1], index: 5, kind: input, shape index: {}]   ;;  %s1361_s6 = inlined_call_operand.vmem [shape: f32[32,32], index: 6, kind: input, shape index: {}]   ;;  %s1362_s7 = inlined_call_operand.vmem [shape: f32[32,1], index: 7, kind: input, shape index: {}]   ;;  %s1363_s8 = inlined_call_operand.vmem [shape: f32[8,32], index: 8, kind: input, shape index: {}]   ;;  %s1364_s9 = inlined_call_operand.vmem [shape: f32[8,1], index: 9, kind: input, shape index: {}]   ;;  %s1365_s10 = inlined_call_operand.vmem [shape: f32[32,32], index: 10, kind: input, shape index: {}]   ;;  %s1366_s11 = inlined_call_operand.vmem [shape: f32[32,1], index: 11, kind: input, shape index: {}]   ;;  %s1367_s12 = inlined_call_operand.vmem [shape: f32[1,32], index: 12, kind: input, shape index: {}]   ;;  %s1368_s13 = inlined_call_operand.<no memory space> [shape: f32[1,1], index: 13, kind: input, shape index: {}]   ;;  %s1369_s14 = inlined_call_operand.hbm [shape: f32[2,128], index: 14, kind: output, shape index: {}]  }
   0x1   :  { %v19_v0 = vstv %s1368_s13 }
   0x2   :  { %20 = vst [vmem:[#allocation2] sm:$0x1] %v19_v0 }
   0x3   :  { %v50_v1 = vld [vmem:[%s1355_s0] sm:$0xff]  ;;  %v51_v2 = vld [vmem:[%s1355_s0 + $0x8] sm:$0xff]  ;;  %vm109_vm0 = vcmask 130048   ;;  %v1098_v5 = vmov 0   ;;  %v63_v7 = vld [vmem:[%s1358_s3 + $0x10] sm:$0xff] }
   0x4   :  { %v53_v3 = vld [vmem:[%s1357_s2] sm:$0xff]  ;;  %v985_v4 = vpack.c.bf16 %v51_v2, %v50_v1  ;;  %1030 = vset.pattern.permute.xlu0 %v1098_v5  ;;  %1031 = vset.pattern.permute.xlu1 %v1098_v5  ;;  %v54_v8 = vld [vmem:[%s1357_s2 + $0x8] sm:$0xff]  ;;  %v55_v9 = vld [vmem:[%s1357_s2 + $0x10] sm:$0xff] }
   0x5   :  { %909 = vmatprep.mubr.msk.f32.mxu0 %vm109_vm0, %v53_v3  ;;  %v61_v6 = vld [vmem:[%s1358_s3] sm:$0xff]  ;;  %81 = vperm.xlu1 %1031, %v63_v7   ;;  %v62_v10 = vld [vmem:[%s1358_s3 + $0x8] sm:$0xff]  ;;  %v64_v11 = vld [vmem:[%s1358_s3 + $0x18] sm:$0xff] }
   0x6   :  { %986 = vmatprep.subr.bf16.mxu0 %v985_v4  ;;  %71 = vperm.xlu0 %1030, %v61_v6   ;;  %v56_v12 = vld [vmem:[%s1357_s2 + $0x18] sm:$0xff]  ;;  %v57_v13 = vld [vmem:[%s1357_s2 + $0x20] sm:$0xff]  ;;  %v252_v15 = vld [vmem:[%s1360_s5 + $0x8] sm:$0xff] }
   0x7   :  { %988 = vmatpush3.bf16.msra.mxu0 %v985_v4  ;;  %v251_v14 = vld [vmem:[%s1360_s5] sm:$0xff] }
   0x9   :  { %86 = vperm.xlu1 %1031, %v64_v11  }
   0xa   :  { %910 = vmatmul.mubr.msk.f32.vlgmr.msra.gmra.mrb[0].mxu0 %vm109_vm0, %v54_v8  ;;  %76 = vperm.xlu0 %1030, %v62_v10  }
   0xb   :  { %912 = vmatprep.mubr.msk.f32.mxu0 %vm109_vm0, %v55_v9 }
   0xc   :  { %21 = vsyncpa [#allocation4], 0  ;;  %v58_v16 = vld [vmem:[%s1357_s2 + $0x28] sm:$0xff]  ;;  %v59_v17 = vld [vmem:[%s1357_s2 + $0x30] sm:$0xff]  ;;  %vm275_vm1 = vcmask 261120   ;;  %vm1100_vm2 = vmmov 0  }
   0xd   :  { %262 = vperm.xlu1 %1031, %v252_v15   ;;  %v253_v18 = vld [vmem:[%s1360_s5 + $0x10] sm:$0xff]  ;;  %v254_v19 = vld [vmem:[%s1360_s5 + $0x18] sm:$0xff]  ;;  %v65_v21 = vld [vmem:[%s1358_s3 + $0x20] sm:$0xff]  ;;  %vm601_vm3 = vcmask 1043456   ;;  %s1102_s19 = smov [#allocation3]  }
   0xe   :  { %913 = vmatmul.mubr.msk.f32.gmra.mrb[2].mxu0 %vm109_vm0, %v56_v12  ;;  %257 = vperm.xlu0 %1030, %v251_v14   ;;  %v60_v20 = vld [vmem:[%s1357_s2 + $0x38] sm:$0xff]  ;;  %v66_v22 = vld [vmem:[%s1358_s3 + $0x28] sm:$0xff]  ;;  %v67_v23 = vld [vmem:[%s1358_s3 + $0x30] sm:$0xff] }
   0xf   :  { %915 = vmatprep.mubr.msk.f32.mxu0 %vm109_vm0, %v57_v13  ;;  %v68_v24 = vld [vmem:[%s1358_s3 + $0x38] sm:$0xff]  ;;  %v381_v25 = vld [vmem:[%s1362_s7] sm:$0xff]  ;;  %v382_v26 = vld [vmem:[%s1362_s7 + $0x8] sm:$0xff] }
  0x10   :  { %v383_v27 = vld [vmem:[%s1362_s7 + $0x10] sm:$0xff]  ;;  %v384_v28 = vld [vmem:[%s1362_s7 + $0x18] sm:$0xff]  ;;  %v613_v29 = vld [vmem:[%s1366_s11] sm:$0xff] }
  0x11   :  { %272 = vperm.xlu1 %1031, %v254_v19   ;;  %v614_v30 = vld [vmem:[%s1366_s11 + $0x8] sm:$0xff]  ;;  %v615_v31 = vld [vmem:[%s1366_s11 + $0x10] sm:$0xff]  ;;  %v616_v32 = vld [vmem:[%s1366_s11 + $0x18] sm:$0xff] }
  0x12   :  { %916 = vmatmul.mubr.msk.f32.gmra.mrb[4].mxu0 %vm109_vm0, %v58_v16  ;;  %267 = vperm.xlu0 %1030, %v253_v18   ;;  %v507_v33 = vld [vmem:[%s1364_s9] sm:$0xff]  ;;  %v248_v8 = vld [vmem:[%s1359_s4 + $0x8] sm:$0xff]  ;;  %v249_v9 = vld [vmem:[%s1359_s4 + $0x10] sm:$0xff]  ;;  %s830_s9 = sshll.u32 %s1102_s19, 4  ;;  %s831_s9 = int_to_ptr.vmem [resolvable:$true] %s830_s9 }
  0x13   :  { %918 = vmatprep.mubr.msk.f32.mxu0 %vm109_vm0, %v59_v17  ;;  %v739_v34 = vld [vmem:[#allocation2] sm:$0x1]  ;;  %v250_v13 = vld [vmem:[%s1359_s4 + $0x18] sm:$0xff]  ;;  %p1079_p1 = scmp.lt.s32.totalorder %s831_s9, %s831_s9 }
  0x14   :  { %v247_v35 = vld [vmem:[%s1359_s4] sm:$0xff] }
  0x15   :  { %96 = vperm.xlu1 %1031, %v66_v22   ;;  %929 = vmatprep.mubr.msk.f32.mxu1 %vm275_vm1, %v247_v35  ;;  %v377_v15 = vld [vmem:[%s1361_s6] sm:$0xff]  ;;  %v611_v35 = vld [vmem:[%s1365_s10 + $0x10] sm:$0xff] }
  0x16   :  { %919 = vmatmul.mubr.msk.f32.gmra.mrb[6].mxu0 %vm109_vm0, %v60_v20  ;;  %91 = vperm.xlu0 %1030, %v65_v21  }
  0x19   :  { %106 = vperm.xlu1 %1031, %v68_v24  }
  0x1a   :  { %101 = vperm.xlu0 %1030, %v67_v23  }
  0x1d   :  { %392 = vperm.xlu1 %1031, %v382_v26  }
  0x1e   :  { %387 = vperm.xlu0 %1030, %v381_v25  }
  0x21   :  { %402 = vperm.xlu1 %1031, %v384_v28  }
  0x22   :  { %397 = vperm.xlu0 %1030, %v383_v27  }
  0x25   :  { %624 = vperm.xlu1 %1031, %v614_v30   ;;  %v378_v30 = vld [vmem:[%s1361_s6 + $0x8] sm:$0xff] }
  0x26   :  { %619 = vperm.xlu0 %1030, %v613_v29  }
  0x29   :  { %634 = vperm.xlu1 %1031, %v616_v32   ;;  %v380_v32 = vld [vmem:[%s1361_s6 + $0x18] sm:$0xff] }
  0x2a   :  { %629 = vperm.xlu0 %1030, %v615_v31   ;;  %v379_v31 = vld [vmem:[%s1361_s6 + $0x10] sm:$0xff] }
  0x2d   :  { %742 = vperm.xlu1 %1031, %v739_v34   ;;  %v610_v34 = vld [vmem:[%s1365_s10 + $0x8] sm:$0xff] }
  0x2e   :  { %510 = vperm.xlu0 %1030, %v507_v33   ;;  %v609_v33 = vld [vmem:[%s1365_s10] sm:$0xff] }
  0x84   :  { %v82_v36 = vpop.permute.xlu1 %81 }
  0x85   :  { %v72_v37 = vpop.permute.xlu0 %71 }
  0x88   :  { %v87_v38 = vpop.permute.xlu1 %86 }
  0x89   :  { %v77_v39 = vpop.permute.xlu0 %76 }
  0x8c   :  { %v263_v40 = vpop.permute.xlu1 %262 }
  0x8d   :  { %v258_v41 = vpop.permute.xlu0 %257 }
  0x90   :  { %v273_v42 = vpop.permute.xlu1 %272 }
  0x91   :  { %v268_v44 = vpop.permute.xlu0 %267 }
  0x94   :  { %v97_v51 = vpop.permute.xlu1 %96 }
  0x95   :  { %v92_v53 = vpop.permute.xlu0 %91 }
  0x98   :  { %v107_v58 = vpop.permute.xlu1 %106 }
  0x99   :  { %v102_v61 = vpop.permute.xlu0 %101 }
  0xdd   :  { %v911_v43 = vpop.f32.mrb[0].mxu0 }
  0xde   :  { %v206_v45 = vadd.f32 %v911_v43, %v77_v39  ;;  %v200_v46 = vpop.f32.mrb[1].mxu0  ;;  %v393_v39 = vpop.permute.xlu1 %392 }
  0xdf   :  { %v201_v47 = vadd.f32 %v200_v46, %v72_v37  ;;  %v1099_v37 = vmov 0.0|0.0  }
  0xe0   :  { %1032 = vtanh.f32 %v206_v45  ;;  %1005 = vmatprep.subr.bf16.mxu0 %v1099_v37 }
  0xe1   :  { %1034 = vtanh.f32 %v201_v47  ;;  %v914_v48 = vpop.f32.mrb[2].mxu0 }
  0xe2   :  { %v216_v49 = vadd.f32 %v914_v48, %v87_v38  ;;  %v210_v50 = vpop.f32.mrb[3].mxu0  ;;  %v1101_v38 = vmov 0.0  }
  0xe3   :  { %v211_v52 = vadd.f32 %v210_v50, %v82_v36  ;;  %v612_v36 = vld [vmem:[%s1365_s10 + $0x18] sm:$0xff]  ;;  %957 = vmatprep.mubr.msk.f32.mxu0 %vm1100_vm2, %v1101_v38 }
  0xe4   :  { %1036 = vtanh.f32 %v216_v49 }
  0xe5   :  { %1038 = vtanh.f32 %v211_v52  ;;  %v917_v54 = vpop.f32.mrb[4].mxu0 }
  0xe6   :  { %v226_v55 = vadd.f32 %v917_v54, %v97_v51  ;;  %v220_v56 = vpop.f32.mrb[5].mxu0 }
  0xe7   :  { %v221_v57 = vadd.f32 %v220_v56, %v92_v53 }
  0xe8   :  { %1040 = vtanh.f32 %v226_v55 }
  0xe9   :  { %1042 = vtanh.f32 %v221_v57  ;;  %v920_v59 = vpop.f32.mrb[6].mxu0 }
  0xea   :  { %v1033_v60 = vpop.eup %1032  ;;  %v236_v62 = vadd.f32 %v920_v59, %v107_v58  ;;  %v230_v63 = vpop.f32.mrb[7].mxu0 }
  0xeb   :  { %v1035_v0 = vpop.eup %1034  ;;  %v231_v1 = vadd.f32 %v230_v63, %v102_v61 }
  0xec   :  { %1044 = vtanh.f32 %v236_v62  ;;  %v989_v2 = vpack.c.bf16 %v1033_v60, %v1035_v0 }
  0xed   :  { %1046 = vtanh.f32 %v231_v1 }
  0xee   :  { %v1037_v3 = vpop.eup %1036  ;;  %990 = vmatprep.subr.bf16.mxu1 %v989_v2 }
  0xef   :  { %v1039_v4 = vpop.eup %1038  ;;  %992 = vmatpush3.bf16.msra.mxu1 %v989_v2 }
  0xf0   :  { %v993_v5 = vpack.c.bf16 %v1037_v3, %v1039_v4 }
  0xf2   :  { %v1041_v6 = vpop.eup %1040  ;;  %994 = vmatprep.subr.bf16.mxu1 %v993_v5 }
  0xf3   :  { %v1043_v7 = vpop.eup %1042  ;;  %996 = vmatpush3.bf16.msra.mxu1 %v993_v5 }
  0xf4   :  { %v1011_v10 = vpack.c.bf16 %v1041_v6, %v1043_v7  ;;  %v506_v6 = vld [vmem:[%s1363_s8] sm:$0xff] }
  0xf6   :  { %v1045_v11 = vpop.eup %1044  ;;  %930 = vmatmul.mubr.msk.f32.vlgmr.msra.gmra.mrb[0].mxu1 %vm275_vm1, %v248_v8 }
  0xf7   :  { %v1047_v12 = vpop.eup %1046  ;;  %932 = vmatprep.mubr.msk.f32.mxu1 %vm275_vm1, %v249_v9 }
  0xf8   :  { %v1015_v14 = vpack.c.bf16 %v1045_v11, %v1047_v12  ;;  %v738_v12 = vld [vmem:[%s1367_s12] sm:$0x1] }
  0xfa   :  { %933 = vmatmul.mubr.msk.f32.gmra.mrb[2].mxu1 %vm275_vm1, %v250_v13  ;;  %v745_v13 = vlaneseq }
  0xfb   :  { %943 = vmatprep.mubr.msk.f32.mxu1 %vm275_vm1, %v377_v15 }
 0x1c9   :  { %v931_v16 = vpop.f32.mrb[0].mxu1 }
 0x1ca   :  { %v360_v17 = vadd.f32 %v931_v16, %v263_v40  ;;  %v354_v18 = vpop.f32.mrb[1].mxu1  ;;  %v388_v40 = vpop.permute.xlu0 %387 }
 0x1cb   :  { %v355_v19 = vadd.f32 %v354_v18, %v258_v41  ;;  %v403_v41 = vpop.permute.xlu1 %402 }
 0x1cc   :  { %1048 = vtanh.f32 %v360_v17 }
 0x1cd   :  { %1050 = vtanh.f32 %v355_v19  ;;  %v934_v20 = vpop.f32.mrb[2].mxu1 }
 0x1ce   :  { %v370_v21 = vadd.f32 %v934_v20, %v273_v42  ;;  %v364_v22 = vpop.f32.mrb[3].mxu1  ;;  %v398_v43 = vpop.permute.xlu0 %397 }
 0x1cf   :  { %v365_v23 = vadd.f32 %v364_v22, %v268_v44  ;;  %v625_v50 = vpop.permute.xlu1 %624 }
 0x1d0   :  { %1052 = vtanh.f32 %v370_v21 }
 0x1d1   :  { %1054 = vtanh.f32 %v365_v23 }
 0x1d2   :  { %v620_v52 = vpop.permute.xlu0 %619 }
 0x1d3   :  { %v635_v57 = vpop.permute.xlu1 %634 }
 0x1d6   :  { %v1049_v24 = vpop.eup %1048  ;;  %v630_v60 = vpop.permute.xlu0 %629 }
 0x1d7   :  { %v1051_v25 = vpop.eup %1050  ;;  %v743_v21 = vpop.permute.xlu1 %742 }
 0x1d8   :  { %v997_v26 = vpack.c.bf16 %v1049_v24, %v1051_v25 }
 0x1da   :  { %v1053_v27 = vpop.eup %1052  ;;  %998 = vmatprep.subr.bf16.mxu1 %v997_v26  ;;  %v511_v15 = vpop.permute.xlu0 %510 }
 0x1db   :  { %v1055_v28 = vpop.eup %1054  ;;  %1000 = vmatpush3.bf16.msra.mxu1 %v997_v26 }
 0x1dc   :  { %v1001_v29 = vpack.c.bf16 %v1053_v27, %v1055_v28  ;;  %v52_v27 = vld [vmem:[%s1356_s1] sm:$0xf]  ;;  %s1074_s1 = scalar_lea.vmem %s831_s9, 32 }
 0x1dd   :  { %p1075_p0 = scmp.ne.s32.totalorder %s831_s9, %s1074_s1  ;;  %p1080_p2 = scmp.lt.s32.totalorder %s1074_s1, %s1074_s1 }
 0x1de   :  { %1002 = vmatprep.subr.bf16.mxu1 %v1001_v29 }
 0x1df   :  { %1004 = vmatpush3.bf16.msra.mxu1 %v1001_v29  ;;  %p1081_p3 = por %p1080_p2, %p1079_p1 }
 0x1e0   :  { %1012 = vmatprep.subr.bf16.mxu1 %v1011_v10 }
 0x1e1   :  { %p1082_p4 = pnand %p1081_p3, %p1075_p0 }
 0x1e2   :  { %944 = vmatmul.mubr.msk.f32.vlgmr.msra.gmra.mrb[4].mxu1 %vm275_vm1, %v378_v30 }
 0x1e3   :  { %1014 = vmatpush3.bf16.msra.mxu1 %v1011_v10  ;;  %946 = vmatprep.mubr.msk.f32.mxu1 %vm275_vm1, %v379_v31 }
 0x1e4   :  { %1016 = vmatprep.subr.bf16.mxu1 %v1015_v14 }
 0x1e6   :  { %947 = vmatmul.mubr.msk.f32.gmra.mrb[6].mxu1 %vm275_vm1, %v380_v32 }
 0x1e7   :  { %1018 = vmatpush3.bf16.msra.mxu1 %v1015_v14  ;;  %968 = vmatprep.mubr.msk.f32.mxu1 %vm275_vm1, %v609_v33  ;;  %v746_v14 = vshrl.u32 %v745_v13, 7 }
 0x1e9   :  { %v747_v19 = vsub.s32 0, %v746_v14 }
 0x1ea   :  { %969 = vmatmul.mubr.msk.f32.vlgmr.msra.gmra.mrb[8].mxu1 %vm275_vm1, %v610_v34 }
 0x1eb   :  { %971 = vmatprep.mubr.msk.f32.mxu1 %vm275_vm1, %v611_v35  ;;  %v748_v23 = vrot.slane %v743_v21, %v747_v19 }
 0x1ee   :  { %972 = vmatmul.mubr.msk.f32.gmra.mrb[10].mxu1 %vm275_vm1, %v612_v36 }
 0x2b5   :  { %v945_v42 = vpop.f32.mrb[4].mxu1 }
 0x2b6   :  { %v489_v44 = vadd.f32 %v945_v42, %v393_v39  ;;  %v483_v45 = vpop.f32.mrb[5].mxu1 }
 0x2b7   :  { %v484_v46 = vadd.f32 %v483_v45, %v388_v40 }
 0x2b8   :  { %1056 = vtanh.f32 %v489_v44 }
 0x2b9   :  { %1058 = vtanh.f32 %v484_v46  ;;  %v948_v47 = vpop.f32.mrb[6].mxu1 }
 0x2ba   :  { %v499_v48 = vadd.f32 %v948_v47, %v403_v41  ;;  %v493_v49 = vpop.f32.mrb[7].mxu1 }
 0x2bb   :  { %v494_v51 = vadd.f32 %v493_v49, %v398_v43 }
 0x2bc   :  { %1060 = vtanh.f32 %v499_v48 }
 0x2bd   :  { %1062 = vtanh.f32 %v494_v51  ;;  %v970_v53 = vpop.f32.mrb[8].mxu1 }
 0x2be   :  { %v721_v54 = vadd.f32 %v970_v53, %v625_v50  ;;  %v715_v55 = vpop.f32.mrb[9].mxu1 }
 0x2bf   :  { %v716_v56 = vadd.f32 %v715_v55, %v620_v52 }
 0x2c0   :  { %1064 = vtanh.f32 %v721_v54 }
 0x2c1   :  { %1066 = vtanh.f32 %v716_v56  ;;  %v973_v58 = vpop.f32.mrb[10].mxu1 }
 0x2c2   :  { %v1057_v59 = vpop.eup %1056  ;;  %v731_v61 = vadd.f32 %v973_v58, %v635_v57  ;;  %v725_v62 = vpop.f32.mrb[11].mxu1 }
 0x2c3   :  { %v1059_v63 = vpop.eup %1058  ;;  %v726_v0 = vadd.f32 %v725_v62, %v630_v60 }
 0x2c4   :  { %1068 = vtanh.f32 %v731_v61  ;;  %v1006_v1 = vpack.c.bf16 %v1057_v59, %v1059_v63 }
 0x2c5   :  { %1070 = vtanh.f32 %v726_v0 }
 0x2c6   :  { %v1061_v2 = vpop.eup %1060  ;;  %1007 = vmatpush3.bf16.msra.mxu0 %v1006_v1 }
 0x2c7   :  { %v1063_v3 = vpop.eup %1062  ;;  %1008 = vmatprep.subr.bf16.mxu0 %v1099_v37 }
 0x2c8   :  { %v1009_v4 = vpack.c.bf16 %v1061_v2, %v1063_v3 }
 0x2ca   :  { %v1065_v5 = vpop.eup %1064  ;;  %1010 = vmatpush3.bf16.msra.mxu0 %v1009_v4 }
 0x2cb   :  { %v1067_v7 = vpop.eup %1066  ;;  %1019 = vmatprep.subr.bf16.mxu0 %v1099_v37 }
 0x2cc   :  { %v1020_v8 = vpack.c.bf16 %v1065_v5, %v1067_v7 }
 0x2cd   :  { %958 = vmatmul.mubr.msk.f32.vlgmr.msra.gmra.mrb[8].mxu0 %vm275_vm1, %v506_v6 }
 0x2ce   :  { %v1069_v9 = vpop.eup %1068  ;;  %1021 = vmatpush3.bf16.msra.mxu0 %v1020_v8  ;;  %982 = vmatprep.mubr.msk.f32.mxu0 %vm1100_vm2, %v1101_v38 }
 0x2cf   :  { %v1071_v10 = vpop.eup %1070  ;;  %1022 = vmatprep.subr.bf16.mxu0 %v1099_v37 }
 0x2d0   :  { %v1023_v11 = vpack.c.bf16 %v1069_v9, %v1071_v10 }
 0x2d2   :  { %1024 = vmatpush3.bf16.msra.mxu0 %v1023_v11 }
 0x2d5   :  { %983 = vmatmul.mubr.msk.f32.vlgmr.msra.gmra.mrb[10].mxu0 %vm275_vm1, %v738_v12 }
 0x3a0   :  { %v582_v16 = vpop.f32.mrb[8].mxu0 }
 0x3a1   :  { %v583_v17 = vadd.f32 %v582_v16, %v511_v15  ;;  %v959_v18 = vpop.f32.mrb[9].mxu0 }
 0x3a3   :  { %v586_v20 = vsub.f32 0.0, %v583_v17  ;;  %v589_v29 = vsub.f32 %v52_v27, %v583_v17  ;;  %v597_v34 = vrot.slane %v583_v17, 4 }
 0x3a5   :  { %v587_v22 = vmul.f32 1.442695, %v586_v20 }
 0x3a7   :  { %1072 = vpow2.f32 %v587_v22 }
 0x3a8   :  { %v818_v24 = vpop.f32.mrb[10].mxu0 }
 0x3a9   :  { %v819_v25 = vadd.f32 %v818_v24, %v748_v23  ;;  %v984_v26 = vpop.f32.mrb[11].mxu0 }
 0x3ab   :  { %823 = vst [vmem:[#allocation3 + $0x1] sm:$0x1] %v819_v25 }
 0x3b1   :  { %v1073_v28 = vpop.eup %1072 }
 0x3b2   :  { %v591_v30 = vrot.slane %v1073_v28, 4 }
 0x3b4   :  { %v593_v31 = vmul.f32 %v591_v30, %v589_v29 }
 0x3b6   :  { %v594_v32 = vmul.f32 %v593_v31, %v593_v31 }
 0x3b8   :  { %v595_v33 = vmul.f32 -0.5, %v594_v32 }
 0x3ba   :  { %v599_v35 = vsub.f32 %v595_v33, %v597_v34 }
 0x3bc   :  { %v855_v36 = vadd.f32 -0.9189385, %v599_v35 }
 0x3be   :  { %v602_v37 = vsel %vm601_vm3, %v855_v36, 0.0 }
 0x3bf   :  { %v603_v38 = vrot.slane %v602_v37, 4 }
 0x3c1   :  { %v604_v39 = vadd.f32 %v603_v38, %v602_v37 }
 0x3c3   :  { %v605_v40 = vrot.slane %v604_v39, 2 }
 0x3c5   :  { %v606_v41 = vadd.f32 %v605_v40, %v604_v39 }
 0x3c7   :  { %v607_v42 = vrot.slane %v606_v41, 1 }
 0x3c9   :  { %v608_v43 = vadd.f32 %v607_v42, %v606_v41 }
 0x3cb   :  { %822 = vst [vmem:[#allocation3] sm:$0x1] %v608_v43 }
 0x3cc   :  { %1085 = shalt.err (!%p1082_p4)
}
 0x3cd   :  { %s1086_s2 = scalar_lea.hbm %s1369_s14, 32 }
 0x3ce   :  { %p1087_p5 = scmp.ne.s32.totalorder %s1369_s14, %s1086_s2  ;;  %p1090_p6 = scmp.lt.u32.totalorder %s1086_s2, %s1369_s14 }
 0x3d0   :  { %p1092_p7 = pnand %p1090_p6, %p1087_p5 }
 0x3d2   :  { %1095 = shalt.err (!%p1092_p7)
}
 0x3d3   :  { %833 = dma.vmem_to_hbm [thread:$0]  %s831_s9, 32, %s1369_s14, [#allocation4]  }
 0x3d4   :  { %1096 = dma.done.wait [#allocation4], 32  }
 0x3d5   :  { %1097 = vsyncadd [#allocation4], 4294967264 }
 0x3d6   :  { %837 = vsyncpa [#allocation4], 1 }

// kernel: tpu_custom_call.1
= control target key start
LH: loop header
LB: loop body
LE: loop exit
PB: predicated region body
PF: predicated region fallthrough
CT: control target
= control target key end

     0   :  { %s1355_s0 = inlined_call_operand.vmem [shape: f32[16,128], index: 0, kind: input, shape index: {}]   ;;  %s1356_s1 = inlined_call_operand.vmem [shape: f32[4,128], index: 1, kind: input, shape index: {}]   ;;  %s1357_s2 = inlined_call_operand.vmem [shape: f32[64,16], index: 2, kind: input, shape index: {}]   ;;  %s1358_s3 = inlined_call_operand.vmem [shape: f32[64,1], index: 3, kind: input, shape index: {}]   ;;  %s1359_s4 = inlined_call_operand.vmem [shape: f32[32,32], index: 4, kind: input, shape index: {}]   ;;  %s1360_s5 = inlined_call_operand.vmem [shape: f32[32,1], index: 5, kind: input, shape index: {}]   ;;  %s1361_s6 = inlined_call_operand.vmem [shape: f32[32,32], index: 6, kind: input, shape index: {}]   ;;  %s1362_s7 = inlined_call_operand.vmem [shape: f32[32,1], index: 7, kind: input, shape index: {}]   ;;  %s1363_s8 = inlined_call_operand.vmem [shape: f32[8,32], index: 8, kind: input, shape index: {}]   ;;  %s1364_s9 = inlined_call_operand.vmem [shape: f32[8,1], index: 9, kind: input, shape index: {}]   ;;  %s1365_s10 = inlined_call_operand.vmem [shape: f32[32,32], index: 10, kind: input, shape index: {}]   ;;  %s1366_s11 = inlined_call_operand.vmem [shape: f32[32,1], index: 11, kind: input, shape index: {}]   ;;  %s1367_s12 = inlined_call_operand.vmem [shape: f32[1,32], index: 12, kind: input, shape index: {}]   ;;  %s1368_s13 = inlined_call_operand.<no memory space> [shape: f32[1,1], index: 13, kind: input, shape index: {}]   ;;  %s1369_s14 = inlined_call_operand.hbm [shape: f32[2,128], index: 14, kind: output, shape index: {}]  }
   0x1   :  { %v19_v0 = vstv %s1368_s13 }
   0x2   :  { %20 = vst [vmem:[#allocation2] sm:$0x1] %v19_v0 }
   0x3   :  { %v50_v1 = vld [vmem:[%s1355_s0] sm:$0xff]  ;;  %v51_v2 = vld [vmem:[%s1355_s0 + $0x8] sm:$0xff]  ;;  %vm109_vm0 = vcmask 130048   ;;  %v1098_v5 = vmov 0   ;;  %v63_v7 = vld [vmem:[%s1358_s3 + $0x10] sm:$0xff] }
   0x4   :  { %v53_v3 = vld [vmem:[%s1357_s2] sm:$0xff]  ;;  %v985_v4 = vpack.c.bf16 %v51_v2, %v50_v1  ;;  %1030 = vset.pattern.permute.xlu0 %v1098_v5  ;;  %1031 = vset.pattern.permute.xlu1 %v1098_v5  ;;  %v54_v8 = vld [vmem:[%s1357_s2 + $0x8] sm:$0xff]  ;;  %v55_v9 = vld [vmem:[%s1357_s2 + $0x10] sm:$0xff] }
   0x5   :  { %909 = vmatprep.mubr.msk.f32.mxu0 %vm109_vm0, %v53_v3  ;;  %v61_v6 = vld [vmem:[%s1358_s3] sm:$0xff]  ;;  %81 = vperm.xlu1 %1031, %v63_v7   ;;  %v62_v10 = vld [vmem:[%s1358_s3 + $0x8] sm:$0xff]  ;;  %v64_v11 = vld [vmem:[%s1358_s3 + $0x18] sm:$0xff] }
   0x6   :  { %986 = vmatprep.subr.bf16.mxu0 %v985_v4  ;;  %71 = vperm.xlu0 %1030, %v61_v6   ;;  %v56_v12 = vld [vmem:[%s1357_s2 + $0x18] sm:$0xff]  ;;  %v57_v13 = vld [vmem:[%s1357_s2 + $0x20] sm:$0xff]  ;;  %v252_v15 = vld [vmem:[%s1360_s5 + $0x8] sm:$0xff] }
   0x7   :  { %988 = vmatpush3.bf16.msra.mxu0 %v985_v4  ;;  %v251_v14 = vld [vmem:[%s1360_s5] sm:$0xff] }
   0x9   :  { %86 = vperm.xlu1 %1031, %v64_v11  }
   0xa   :  { %910 = vmatmul.mubr.msk.f32.vlgmr.msra.gmra.mrb[0].mxu0 %vm109_vm0, %v54_v8  ;;  %76 = vperm.xlu0 %1030, %v62_v10  }
   0xb   :  { %912 = vmatprep.mubr.msk.f32.mxu0 %vm109_vm0, %v55_v9 }
   0xc   :  { %21 = vsyncpa [#allocation4], 0  ;;  %v58_v16 = vld [vmem:[%s1357_s2 + $0x28] sm:$0xff]  ;;  %v59_v17 = vld [vmem:[%s1357_s2 + $0x30] sm:$0xff]  ;;  %vm275_vm1 = vcmask 261120   ;;  %vm1100_vm2 = vmmov 0  }
   0xd   :  { %262 = vperm.xlu1 %1031, %v252_v15   ;;  %v253_v18 = vld [vmem:[%s1360_s5 + $0x10] sm:$0xff]  ;;  %v254_v19 = vld [vmem:[%s1360_s5 + $0x18] sm:$0xff]  ;;  %v65_v21 = vld [vmem:[%s1358_s3 + $0x20] sm:$0xff]  ;;  %vm601_vm3 = vcmask 1043456   ;;  %s1102_s19 = smov [#allocation3]  }
   0xe   :  { %913 = vmatmul.mubr.msk.f32.gmra.mrb[2].mxu0 %vm109_vm0, %v56_v12  ;;  %257 = vperm.xlu0 %1030, %v251_v14   ;;  %v60_v20 = vld [vmem:[%s1357_s2 + $0x38] sm:$0xff]  ;;  %v66_v22 = vld [vmem:[%s1358_s3 + $0x28] sm:$0xff]  ;;  %v67_v23 = vld [vmem:[%s1358_s3 + $0x30] sm:$0xff] }
   0xf   :  { %915 = vmatprep.mubr.msk.f32.mxu0 %vm109_vm0, %v57_v13  ;;  %v68_v24 = vld [vmem:[%s1358_s3 + $0x38] sm:$0xff]  ;;  %v381_v25 = vld [vmem:[%s1362_s7] sm:$0xff]  ;;  %v382_v26 = vld [vmem:[%s1362_s7 + $0x8] sm:$0xff] }
  0x10   :  { %v383_v27 = vld [vmem:[%s1362_s7 + $0x10] sm:$0xff]  ;;  %v384_v28 = vld [vmem:[%s1362_s7 + $0x18] sm:$0xff]  ;;  %v613_v29 = vld [vmem:[%s1366_s11] sm:$0xff] }
  0x11   :  { %272 = vperm.xlu1 %1031, %v254_v19   ;;  %v614_v30 = vld [vmem:[%s1366_s11 + $0x8] sm:$0xff]  ;;  %v615_v31 = vld [vmem:[%s1366_s11 + $0x10] sm:$0xff]  ;;  %v616_v32 = vld [vmem:[%s1366_s11 + $0x18] sm:$0xff] }
  0x12   :  { %916 = vmatmul.mubr.msk.f32.gmra.mrb[4].mxu0 %vm109_vm0, %v58_v16  ;;  %267 = vperm.xlu0 %1030, %v253_v18   ;;  %v507_v33 = vld [vmem:[%s1364_s9] sm:$0xff]  ;;  %v248_v8 = vld [vmem:[%s1359_s4 + $0x8] sm:$0xff]  ;;  %v249_v9 = vld [vmem:[%s1359_s4 + $0x10] sm:$0xff]  ;;  %s830_s9 = sshll.u32 %s1102_s19, 4  ;;  %s831_s9 = int_to_ptr.vmem [resolvable:$true] %s830_s9 }
  0x13   :  { %918 = vmatprep.mubr.msk.f32.mxu0 %vm109_vm0, %v59_v17  ;;  %v739_v34 = vld [vmem:[#allocation2] sm:$0x1]  ;;  %v250_v13 = vld [vmem:[%s1359_s4 + $0x18] sm:$0xff]  ;;  %p1079_p1 = scmp.lt.s32.totalorder %s831_s9, %s831_s9 }
  0x14   :  { %v247_v35 = vld [vmem:[%s1359_s4] sm:$0xff] }
  0x15   :  { %96 = vperm.xlu1 %1031, %v66_v22   ;;  %929 = vmatprep.mubr.msk.f32.mxu1 %vm275_vm1, %v247_v35  ;;  %v377_v15 = vld [vmem:[%s1361_s6] sm:$0xff]  ;;  %v611_v35 = vld [vmem:[%s1365_s10 + $0x10] sm:$0xff] }
  0x16   :  { %919 = vmatmul.mubr.msk.f32.gmra.mrb[6].mxu0 %vm109_vm0, %v60_v20  ;;  %91 = vperm.xlu0 %1030, %v65_v21  }
  0x19   :  { %106 = vperm.xlu1 %1031, %v68_v24  }
  0x1a   :  { %101 = vperm.xlu0 %1030, %v67_v23  }
  0x1d   :  { %392 = vperm.xlu1 %1031, %v382_v26  }
  0x1e   :  { %387 = vperm.xlu0 %1030, %v381_v25  }
  0x21   :  { %402 = vperm.xlu1 %1031, %v384_v28  }
  0x22   :  { %397 = vperm.xlu0 %1030, %v383_v27  }
  0x25   :  { %624 = vperm.xlu1 %1031, %v614_v30   ;;  %v378_v30 = vld [vmem:[%s1361_s6 + $0x8] sm:$0xff] }
  0x26   :  { %619 = vperm.xlu0 %1030, %v613_v29  }
  0x29   :  { %634 = vperm.xlu1 %1031, %v616_v32   ;;  %v380_v32 = vld [vmem:[%s1361_s6 + $0x18] sm:$0xff] }
  0x2a   :  { %629 = vperm.xlu0 %1030, %v615_v31   ;;  %v379_v31 = vld [vmem:[%s1361_s6 + $0x10] sm:$0xff] }
  0x2d   :  { %742 = vperm.xlu1 %1031, %v739_v34   ;;  %v610_v34 = vld [vmem:[%s1365_s10 + $0x8] sm:$0xff] }
  0x2e   :  { %510 = vperm.xlu0 %1030, %v507_v33   ;;  %v609_v33 = vld [vmem:[%s1365_s10] sm:$0xff] }
  0x84   :  { %v82_v36 = vpop.permute.xlu1 %81 }
  0x85   :  { %v72_v37 = vpop.permute.xlu0 %71 }
  0x88   :  { %v87_v38 = vpop.permute.xlu1 %86 }
  0x89   :  { %v77_v39 = vpop.permute.xlu0 %76 }
  0x8c   :  { %v263_v40 = vpop.permute.xlu1 %262 }
  0x8d   :  { %v258_v41 = vpop.permute.xlu0 %257 }
  0x90   :  { %v273_v42 = vpop.permute.xlu1 %272 }
  0x91   :  { %v268_v44 = vpop.permute.xlu0 %267 }
  0x94   :  { %v97_v51 = vpop.permute.xlu1 %96 }
  0x95   :  { %v92_v53 = vpop.permute.xlu0 %91 }
  0x98   :  { %v107_v58 = vpop.permute.xlu1 %106 }
  0x99   :  { %v102_v61 = vpop.permute.xlu0 %101 }
  0xdd   :  { %v911_v43 = vpop.f32.mrb[0].mxu0 }
  0xde   :  { %v206_v45 = vadd.f32 %v911_v43, %v77_v39  ;;  %v200_v46 = vpop.f32.mrb[1].mxu0  ;;  %v393_v39 = vpop.permute.xlu1 %392 }
  0xdf   :  { %v201_v47 = vadd.f32 %v200_v46, %v72_v37  ;;  %v1099_v37 = vmov 0.0|0.0  }
  0xe0   :  { %1032 = vtanh.f32 %v206_v45  ;;  %1005 = vmatprep.subr.bf16.mxu0 %v1099_v37 }
  0xe1   :  { %1034 = vtanh.f32 %v201_v47  ;;  %v914_v48 = vpop.f32.mrb[2].mxu0 }
  0xe2   :  { %v216_v49 = vadd.f32 %v914_v48, %v87_v38  ;;  %v210_v50 = vpop.f32.mrb[3].mxu0  ;;  %v1101_v38 = vmov 0.0  }
  0xe3   :  { %v211_v52 = vadd.f32 %v210_v50, %v82_v36  ;;  %v612_v36 = vld [vmem:[%s1365_s10 + $0x18] sm:$0xff]  ;;  %957 = vmatprep.mubr.msk.f32.mxu0 %vm1100_vm2, %v1101_v38 }
  0xe4   :  { %1036 = vtanh.f32 %v216_v49 }
  0xe5   :  { %1038 = vtanh.f32 %v211_v52  ;;  %v917_v54 = vpop.f32.mrb[4].mxu0 }
  0xe6   :  { %v226_v55 = vadd.f32 %v917_v54, %v97_v51  ;;  %v220_v56 = vpop.f32.mrb[5].mxu0 }
  0xe7   :  { %v221_v57 = vadd.f32 %v220_v56, %v92_v53 }
  0xe8   :  { %1040 = vtanh.f32 %v226_v55 }
  0xe9   :  { %1042 = vtanh.f32 %v221_v57  ;;  %v920_v59 = vpop.f32.mrb[6].mxu0 }
  0xea   :  { %v1033_v60 = vpop.eup %1032  ;;  %v236_v62 = vadd.f32 %v920_v59, %v107_v58  ;;  %v230_v63 = vpop.f32.mrb[7].mxu0 }
  0xeb   :  { %v1035_v0 = vpop.eup %1034  ;;  %v231_v1 = vadd.f32 %v230_v63, %v102_v61 }
  0xec   :  { %1044 = vtanh.f32 %v236_v62  ;;  %v989_v2 = vpack.c.bf16 %v1033_v60, %v1035_v0 }
  0xed   :  { %1046 = vtanh.f32 %v231_v1 }
  0xee   :  { %v1037_v3 = vpop.eup %1036  ;;  %990 = vmatprep.subr.bf16.mxu1 %v989_v2 }
  0xef   :  { %v1039_v4 = vpop.eup %1038  ;;  %992 = vmatpush3.bf16.msra.mxu1 %v989_v2 }
  0xf0   :  { %v993_v5 = vpack.c.bf16 %v1037_v3, %v1039_v4 }
  0xf2   :  { %v1041_v6 = vpop.eup %1040  ;;  %994 = vmatprep.subr.bf16.mxu1 %v993_v5 }
  0xf3   :  { %v1043_v7 = vpop.eup %1042  ;;  %996 = vmatpush3.bf16.msra.mxu1 %v993_v5 }
  0xf4   :  { %v1011_v10 = vpack.c.bf16 %v1041_v6, %v1043_v7  ;;  %v506_v6 = vld [vmem:[%s1363_s8] sm:$0xff] }
  0xf6   :  { %v1045_v11 = vpop.eup %1044  ;;  %930 = vmatmul.mubr.msk.f32.vlgmr.msra.gmra.mrb[0].mxu1 %vm275_vm1, %v248_v8 }
  0xf7   :  { %v1047_v12 = vpop.eup %1046  ;;  %932 = vmatprep.mubr.msk.f32.mxu1 %vm275_vm1, %v249_v9 }
  0xf8   :  { %v1015_v14 = vpack.c.bf16 %v1045_v11, %v1047_v12  ;;  %v738_v12 = vld [vmem:[%s1367_s12] sm:$0x1] }
  0xfa   :  { %933 = vmatmul.mubr.msk.f32.gmra.mrb[2].mxu1 %vm275_vm1, %v250_v13  ;;  %v745_v13 = vlaneseq }
  0xfb   :  { %943 = vmatprep.mubr.msk.f32.mxu1 %vm275_vm1, %v377_v15 }
 0x1c9   :  { %v931_v16 = vpop.f32.mrb[0].mxu1 }
 0x1ca   :  { %v360_v17 = vadd.f32 %v931_v16, %v263_v40  ;;  %v354_v18 = vpop.f32.mrb[1].mxu1  ;;  %v388_v40 = vpop.permute.xlu0 %387 }
 0x1cb   :  { %v355_v19 = vadd.f32 %v354_v18, %v258_v41  ;;  %v403_v41 = vpop.permute.xlu1 %402 }
 0x1cc   :  { %1048 = vtanh.f32 %v360_v17 }
 0x1cd   :  { %1050 = vtanh.f32 %v355_v19  ;;  %v934_v20 = vpop.f32.mrb[2].mxu1 }
 0x1ce   :  { %v370_v21 = vadd.f32 %v934_v20, %v273_v42  ;;  %v364_v22 = vpop.f32.mrb[3].mxu1  ;;  %v398_v43 = vpop.permute.xlu0 %397 }
 0x1cf   :  { %v365_v23 = vadd.f32 %v364_v22, %v268_v44  ;;  %v625_v50 = vpop.permute.xlu1 %624 }
 0x1d0   :  { %1052 = vtanh.f32 %v370_v21 }
 0x1d1   :  { %1054 = vtanh.f32 %v365_v23 }
 0x1d2   :  { %v620_v52 = vpop.permute.xlu0 %619 }
 0x1d3   :  { %v635_v57 = vpop.permute.xlu1 %634 }
 0x1d6   :  { %v1049_v24 = vpop.eup %1048  ;;  %v630_v60 = vpop.permute.xlu0 %629 }
 0x1d7   :  { %v1051_v25 = vpop.eup %1050  ;;  %v743_v21 = vpop.permute.xlu1 %742 }
 0x1d8   :  { %v997_v26 = vpack.c.bf16 %v1049_v24, %v1051_v25 }
 0x1da   :  { %v1053_v27 = vpop.eup %1052  ;;  %998 = vmatprep.subr.bf16.mxu1 %v997_v26  ;;  %v511_v15 = vpop.permute.xlu0 %510 }
 0x1db   :  { %v1055_v28 = vpop.eup %1054  ;;  %1000 = vmatpush3.bf16.msra.mxu1 %v997_v26 }
 0x1dc   :  { %v1001_v29 = vpack.c.bf16 %v1053_v27, %v1055_v28  ;;  %v52_v27 = vld [vmem:[%s1356_s1] sm:$0xf]  ;;  %s1074_s1 = scalar_lea.vmem %s831_s9, 32 }
 0x1dd   :  { %p1075_p0 = scmp.ne.s32.totalorder %s831_s9, %s1074_s1  ;;  %p1080_p2 = scmp.lt.s32.totalorder %s1074_s1, %s1074_s1 }
 0x1de   :  { %1002 = vmatprep.subr.bf16.mxu1 %v1001_v29 }
 0x1df   :  { %1004 = vmatpush3.bf16.msra.mxu1 %v1001_v29  ;;  %p1081_p3 = por %p1080_p2, %p1079_p1 }
 0x1e0   :  { %1012 = vmatprep.subr.bf16.mxu1 %v1011_v10 }
 0x1e1   :  { %p1082_p4 = pnand %p1081_p3, %p1075_p0 }
 0x1e2   :  { %944 = vmatmul.mubr.msk.f32.vlgmr.msra.gmra.mrb[4].mxu1 %vm275_vm1, %v378_v30 }
 0x1e3   :  { %1014 = vmatpush3.bf16.msra.mxu1 %v1011_v10  ;;  %946 = vmatprep.mubr.msk.f32.mxu1 %vm275_vm1, %v379_v31 }
 0x1e4   :  { %1016 = vmatprep.subr.bf16.mxu1 %v1015_v14 }
 0x1e6   :  { %947 = vmatmul.mubr.msk.f32.gmra.mrb[6].mxu1 %vm275_vm1, %v380_v32 }
 0x1e7   :  { %1018 = vmatpush3.bf16.msra.mxu1 %v1015_v14  ;;  %968 = vmatprep.mubr.msk.f32.mxu1 %vm275_vm1, %v609_v33  ;;  %v746_v14 = vshrl.u32 %v745_v13, 7 }
 0x1e9   :  { %v747_v19 = vsub.s32 0, %v746_v14 }
 0x1ea   :  { %969 = vmatmul.mubr.msk.f32.vlgmr.msra.gmra.mrb[8].mxu1 %vm275_vm1, %v610_v34 }
 0x1eb   :  { %971 = vmatprep.mubr.msk.f32.mxu1 %vm275_vm1, %v611_v35  ;;  %v748_v23 = vrot.slane %v743_v21, %v747_v19 }
 0x1ee   :  { %972 = vmatmul.mubr.msk.f32.gmra.mrb[10].mxu1 %vm275_vm1, %v612_v36 }
 0x2b5   :  { %v945_v42 = vpop.f32.mrb[4].mxu1 }
 0x2b6   :  { %v489_v44 = vadd.f32 %v945_v42, %v393_v39  ;;  %v483_v45 = vpop.f32.mrb[5].mxu1 }
 0x2b7   :  { %v484_v46 = vadd.f32 %v483_v45, %v388_v40 }
 0x2b8   :  { %1056 = vtanh.f32 %v489_v44 }
 0x2b9   :  { %1058 = vtanh.f32 %v484_v46  ;;  %v948_v47 = vpop.f32.mrb[6].mxu1 }
 0x2ba   :  { %v499_v48 = vadd.f32 %v948_v47, %v403_v41  ;;  %v493_v49 = vpop.f32.mrb[7].mxu1 }
 0x2bb   :  { %v494_v51 = vadd.f32 %v493_v49, %v398_v43 }
 0x2bc   :  { %1060 = vtanh.f32 %v499_v48 }
 0x2bd   :  { %1062 = vtanh.f32 %v494_v51  ;;  %v970_v53 = vpop.f32.mrb[8].mxu1 }
 0x2be   :  { %v721_v54 = vadd.f32 %v970_v53, %v625_v50  ;;  %v715_v55 = vpop.f32.mrb[9].mxu1 }
 0x2bf   :  { %v716_v56 = vadd.f32 %v715_v55, %v620_v52 }
 0x2c0   :  { %1064 = vtanh.f32 %v721_v54 }
 0x2c1   :  { %1066 = vtanh.f32 %v716_v56  ;;  %v973_v58 = vpop.f32.mrb[10].mxu1 }
 0x2c2   :  { %v1057_v59 = vpop.eup %1056  ;;  %v731_v61 = vadd.f32 %v973_v58, %v635_v57  ;;  %v725_v62 = vpop.f32.mrb[11].mxu1 }
 0x2c3   :  { %v1059_v63 = vpop.eup %1058  ;;  %v726_v0 = vadd.f32 %v725_v62, %v630_v60 }
 0x2c4   :  { %1068 = vtanh.f32 %v731_v61  ;;  %v1006_v1 = vpack.c.bf16 %v1057_v59, %v1059_v63 }
 0x2c5   :  { %1070 = vtanh.f32 %v726_v0 }
 0x2c6   :  { %v1061_v2 = vpop.eup %1060  ;;  %1007 = vmatpush3.bf16.msra.mxu0 %v1006_v1 }
 0x2c7   :  { %v1063_v3 = vpop.eup %1062  ;;  %1008 = vmatprep.subr.bf16.mxu0 %v1099_v37 }
 0x2c8   :  { %v1009_v4 = vpack.c.bf16 %v1061_v2, %v1063_v3 }
 0x2ca   :  { %v1065_v5 = vpop.eup %1064  ;;  %1010 = vmatpush3.bf16.msra.mxu0 %v1009_v4 }
 0x2cb   :  { %v1067_v7 = vpop.eup %1066  ;;  %1019 = vmatprep.subr.bf16.mxu0 %v1099_v37 }
 0x2cc   :  { %v1020_v8 = vpack.c.bf16 %v1065_v5, %v1067_v7 }
 0x2cd   :  { %958 = vmatmul.mubr.msk.f32.vlgmr.msra.gmra.mrb[8].mxu0 %vm275_vm1, %v506_v6 }
 0x2ce   :  { %v1069_v9 = vpop.eup %1068  ;;  %1021 = vmatpush3.bf16.msra.mxu0 %v1020_v8  ;;  %982 = vmatprep.mubr.msk.f32.mxu0 %vm1100_vm2, %v1101_v38 }
 0x2cf   :  { %v1071_v10 = vpop.eup %1070  ;;  %1022 = vmatprep.subr.bf16.mxu0 %v1099_v37 }
 0x2d0   :  { %v1023_v11 = vpack.c.bf16 %v1069_v9, %v1071_v10 }
 0x2d2   :  { %1024 = vmatpush3.bf16.msra.mxu0 %v1023_v11 }
 0x2d5   :  { %983 = vmatmul.mubr.msk.f32.vlgmr.msra.gmra.mrb[10].mxu0 %vm275_vm1, %v738_v12 }
 0x3a0   :  { %v582_v16 = vpop.f32.mrb[8].mxu0 }
 0x3a1   :  { %v583_v17 = vadd.f32 %v582_v16, %v511_v15  ;;  %v959_v18 = vpop.f32.mrb[9].mxu0 }
 0x3a3   :  { %v586_v20 = vsub.f32 0.0, %v583_v17  ;;  %v589_v29 = vsub.f32 %v52_v27, %v583_v17  ;;  %v597_v34 = vrot.slane %v583_v17, 4 }
 0x3a5   :  { %v587_v22 = vmul.f32 1.442695, %v586_v20 }
 0x3a7   :  { %1072 = vpow2.f32 %v587_v22 }
 0x3a8   :  { %v818_v24 = vpop.f32.mrb[10].mxu0 }
 0x3a9   :  { %v819_v25 = vadd.f32 %v818_v24, %v748_v23  ;;  %v984_v26 = vpop.f32.mrb[11].mxu0 }
 0x3ab   :  { %823 = vst [vmem:[#allocation3 + $0x1] sm:$0x1] %v819_v25 }
 0x3b1   :  { %v1073_v28 = vpop.eup %1072 }
 0x3b2   :  { %v591_v30 = vrot.slane %v1073_v28, 4 }
 0x3b4   :  { %v593_v31 = vmul.f32 %v591_v30, %v589_v29 }
 0x3b6   :  { %v594_v32 = vmul.f32 %v593_v31, %v593_v31 }
 0x3b8   :  { %v595_v33 = vmul.f32 -0.5, %v594_v32 }
 0x3ba   :  { %v599_v35 = vsub.f32 %v595_v33, %v597_v34 }
 0x3bc   :  { %v855_v36 = vadd.f32 -0.9189385, %v599_v35 }
 0x3be   :  { %v602_v37 = vsel %vm601_vm3, %v855_v36, 0.0 }
 0x3bf   :  { %v603_v38 = vrot.slane %v602_v37, 4 }
 0x3c1   :  { %v604_v39 = vadd.f32 %v603_v38, %v602_v37 }
 0x3c3   :  { %v605_v40 = vrot.slane %v604_v39, 2 }
 0x3c5   :  { %v606_v41 = vadd.f32 %v605_v40, %v604_v39 }
 0x3c7   :  { %v607_v42 = vrot.slane %v606_v41, 1 }
 0x3c9   :  { %v608_v43 = vadd.f32 %v607_v42, %v606_v41 }
 0x3cb   :  { %822 = vst [vmem:[#allocation3] sm:$0x1] %v608_v43 }
 0x3cc   :  { %1085 = shalt.err (!%p1082_p4)
}
 0x3cd   :  { %s1086_s2 = scalar_lea.hbm %s1369_s14, 32 }
 0x3ce   :  { %p1087_p5 = scmp.ne.s32.totalorder %s1369_s14, %s1086_s2  ;;  %p1090_p6 = scmp.lt.u32.totalorder %s1086_s2, %s1369_s14 }
 0x3d0   :  { %p1092_p7 = pnand %p1090_p6, %p1087_p5 }
 0x3d2   :  { %1095 = shalt.err (!%p1092_p7)
}
 0x3d3   :  { %833 = dma.vmem_to_hbm [thread:$0]  %s831_s9, 32, %s1369_s14, [#allocation4]  }
 0x3d4   :  { %1096 = dma.done.wait [#allocation4], 32  }
 0x3d5   :  { %1097 = vsyncadd [#allocation4], 4294967264 }
 0x3d6   :  { %837 = vsyncpa [#allocation4], 1 }

</bundles_post_ra>
